<compile_context>
chip_gen: v7x
topology: tpu7x:2x2x1
jax: 0.10.0
libtpu: 0.0.40
codegen_flags: <defaults>
</compile_context>

<pallas_src>
import functools

import jax
import jax.numpy as jnp
import numpy as np
from jax.experimental import pallas as pl
from jax.experimental.pallas import tpu as pltpu


# --------------------------------------------------------------------------- #
# Fused kernel: embedding gather + n_layers LSTM cells + vocab-tiled decoder
# --------------------------------------------------------------------------- #

def _fused_kernel(n_layers, vocab,
                  ids_ref,                 # (B,) int32  SMEM (scalar prefetch)
                  emb_hbm,                 # (V, H) f32  HBM (pl.ANY)
                  h0_ref, c0_ref,          # (B, H) f32  (layer-sliced blocks)
                  w_ref,                   # (2H, 4H) bf16  [W_ih^T ; W_hh^T]
                  b_ref,                   # (1, 4H) f32    b_ih + b_hh
                  wdec_ref,                # (H, TILE_V) bf16  decoder weight tile
                  bdec_ref,                # (1, TILE_V) f32   decoder bias tile
                  h_out_ref, c_out_ref,    # (B, H) f32  (layer-sliced blocks)
                  logits_ref,              # (B, TILE_V) f32
                  xh_ref,                  # (B, 2H) f32 VMEM scratch: [x | h_prev]
                  hlast_ref,               # (B, H) bf16 VMEM scratch: last-layer h
                  gather_sem):             # single DMA semaphore, shape ()
    s = pl.program_id(0)
    B = xh_ref.shape[0]
    H = xh_ref.shape[1] // 2

    # ---------------- LSTM phase: grid steps 0 .. n_layers-1 ---------------- #
    @pl.when(s < n_layers)
    def _lstm():
        # Layer 0: DMA-gather the B embedding rows straight into xh[:, :H].
        # B is small & static -> per-row DMAs on one shared semaphore.
        # TODO(synk): for B >> 16, stage into fewer/larger transfers instead.
        @pl.when(s == 0)
        def _gather():
            copies = []
            for i in range(B):
                tok = jnp.minimum(jnp.maximum(ids_ref[i], 0), vocab - 1)
                cp = pltpu.make_async_copy(
                    emb_hbm.at[pl.ds(tok, 1), :],
                    xh_ref.at[pl.ds(i, 1), pl.ds(0, H)],
                    gather_sem)
                cp.start()
                copies.append(cp)
            for cp in copies:
                cp.wait()

        c_prev = c0_ref[...]                       # (B, H) f32
        xh_ref[:, H:] = h0_ref[...]                # h_prev into right half

        # Fused gate matmul: one MXU dot  [x | h] (B,2H) @ [W_ih^T ; W_hh^T] (2H,4H).
        xh_bf = xh_ref[...].astype(jnp.bfloat16)
        gates = jnp.dot(xh_bf, w_ref[...],
                        preferred_element_type=jnp.float32) + b_ref[...]

        # H == 128 -> each gate slice is a clean, lane-aligned 128-wide slab.
        i_g = jax.nn.sigmoid(gates[:, 0 * H:1 * H])
        f_g = jax.nn.sigmoid(gates[:, 1 * H:2 * H])
        g_g = jnp.tanh(gates[:, 2 * H:3 * H])
        o_g = jax.nn.sigmoid(gates[:, 3 * H:4 * H])

        c_new = f_g * c_prev + i_g * g_g
        h_new = o_g * jnp.tanh(c_new)

        h_out_ref[...] = h_new
        c_out_ref[...] = c_new
        xh_ref[:, 0:H] = h_new                     # feed next layer (VMEM-resident)

        @pl.when(s == n_layers - 1)
        def _store_hlast():
            hlast_ref[...] = h_new.astype(jnp.bfloat16)   # cast once for decoder

    # -------------- decoder phase: grid steps n_layers .. end --------------- #
    @pl.when(s >= n_layers)
    def _decode():
        logits_ref[...] = (
            jnp.dot(hlast_ref[...], wdec_ref[...],
                    preferred_element_type=jnp.float32) + bdec_ref[...])


# --------------------------------- forward --------------------------------- #

def word_rnn_forward(params, input_ids, hidden, *, tile_v=None):
    """Equivalent of Model.forward(input, hidden) with bidirectional=False.

    input_ids : (B,) int32
    hidden    : (h0, c0), each (n_layers, B, H)
    returns   : (logits (B, V), (h_new, c_new))
    """
    h0, c0 = hidden
    n_layers, B, H = h0.shape
    V = params["wdec_t"].shape[1]

    if tile_v is None:
        tile_v = min(V, 2048)      # large lane-dense tiles; single step at small V
    assert V % tile_v == 0, "vocab must be a multiple of the decoder tile"
    n_vtiles = V // tile_v
    n_steps = n_layers + n_vtiles
    last_layer = n_layers - 1

    # LSTM-phase blocks: walk the layer axis, clamp (stay resident) in decode phase.
    def lstm_idx(s, ids):
        return (jnp.minimum(s, last_layer), 0, 0)

    # Decoder-phase blocks: clamp to tile 0 during the LSTM phase so the first
    # decoder weight tile's DMA overlaps the LSTM compute, then walk vocab tiles.
    def dec_idx(s, ids):
        return (0, jnp.maximum(s - n_layers, 0))

    grid_spec = pltpu.PrefetchScalarGridSpec(
        num_scalar_prefetch=1,
        grid=(n_steps,),
        in_specs=[
            pl.BlockSpec(memory_space=pl.ANY),                     # emb table (HBM)
            pl.BlockSpec((None, B, H), lstm_idx),                  # h0[l]
            pl.BlockSpec((None, B, H), lstm_idx),                  # c0[l]
            pl.BlockSpec((None, 2 * H, 4 * H), lstm_idx),          # weights[l] bf16
            pl.BlockSpec((None, 1, 4 * H), lstm_idx),              # bias[l]
            pl.BlockSpec((H, tile_v), dec_idx),                    # W_dec tile bf16
            pl.BlockSpec((1, tile_v), dec_idx),                    # b_dec tile
        ],
        out_specs=[
            pl.BlockSpec((None, B, H), lstm_idx),                  # h_new[l]
            pl.BlockSpec((None, B, H), lstm_idx),                  # c_new[l]
            pl.BlockSpec((B, tile_v), dec_idx),                    # logits tile
        ],
        scratch_shapes=[
            pltpu.VMEM((B, 2 * H), jnp.float32),    # [x | h_prev] carry
            pltpu.VMEM((B, H), jnp.bfloat16),       # h_last (bf16, cast once)
            pltpu.SemaphoreType.DMA(()),            # single embedding-gather sem
        ],
    )

    kernel = functools.partial(_fused_kernel, n_layers, V)

    h_new, c_new, logits = pl.pallas_call(
        kernel,
        grid_spec=grid_spec,
        out_shape=(
            jax.ShapeDtypeStruct((n_layers, B, H), jnp.float32),
            jax.ShapeDtypeStruct((n_layers, B, H), jnp.float32),
            jax.ShapeDtypeStruct((B, V), jnp.float32),
        ),
        compiler_params=pltpu.CompilerParams(
            # State carry (xh / hlast scratch) across the fused axis -> sequential.
            dimension_semantics=("arbitrary",),
            # Explicit scoped-VMEM budget (safe on v5e/v6e/v7x); re-derive if H or
            # tile_v grows (double-buffered bf16 blocks: 16*H^2 + 2*H*tile_v bytes).
            vmem_limit_bytes=32 * 1024 * 1024,
        ),
    )(input_ids.astype(jnp.int32), params["emb"], h0, c0,
      params["w_cat_t"], params["b"], params["wdec_t"], params["bdec"])

    return logits, (h_new, c_new)


# ---------------------------- pure-JAX reference ---------------------------- #

def word_rnn_reference(params, input_ids, hidden):
    h0, c0 = hidden
    n_layers, B, H = h0.shape
    V = params["wdec_t"].shape[1]
    hi = jax.lax.Precision.HIGHEST

    x = params["emb"][jnp.clip(input_ids, 0, V - 1)]
    hs, cs = [], []
    for l in range(n_layers):
        w = params["w_cat_t"][l].astype(jnp.float32)
        b = params["b"][l]
        gates = jnp.dot(jnp.concatenate([x, h0[l]], axis=-1), w, precision=hi) + b
        i_g = jax.nn.sigmoid(gates[:, 0 * H:1 * H])
        f_g = jax.nn.sigmoid(gates[:, 1 * H:2 * H])
        g_g = jnp.tanh(gates[:, 2 * H:3 * H])
        o_g = jax.nn.sigmoid(gates[:, 3 * H:4 * H])
        c = f_g * c0[l] + i_g * g_g
        h = o_g * jnp.tanh(c)
        hs.append(h)
        cs.append(c)
        x = h
    logits = (jnp.dot(hs[-1], params["wdec_t"].astype(jnp.float32), precision=hi)
              + params["bdec"])
    return logits, (jnp.stack(hs), jnp.stack(cs))


# ------------------------------- param init -------------------------------- #

def init_params(key, vocab, hidden, n_layers):
    """Deterministic init mimicking PyTorch defaults (U(-1/sqrt(H), 1/sqrt(H)))."""
    ks = jax.random.split(key, 2 + 4 * n_layers + 2)
    bound = 1.0 / jnp.sqrt(jnp.float32(hidden))

    # Embedding stays f32 so each row gather is a clean 32-bit-row DMA.
    emb = jax.random.normal(ks[0], (vocab, hidden), jnp.float32)

    w_cat_t, b = [], []
    for l in range(n_layers):
        k_wih, k_whh, k_bih, k_bhh = ks[2 + 4 * l: 2 + 4 * l + 4]
        wih_t = jax.random.uniform(k_wih, (hidden, 4 * hidden), jnp.float32,
                                   -bound, bound)               # W_ih^T
        whh_t = jax.random.uniform(k_whh, (hidden, 4 * hidden), jnp.float32,
                                   -bound, bound)               # W_hh^T
        bih = jax.random.uniform(k_bih, (1, 4 * hidden), jnp.float32, -bound, bound)
        bhh = jax.random.uniform(k_bhh, (1, 4 * hidden), jnp.float32, -bound, bound)
        # Fused-gate weight: [W_ih^T ; W_hh^T], stored bf16 (weight streaming).
        w_cat_t.append(jnp.concatenate([wih_t, whh_t], axis=0).astype(jnp.bfloat16))
        b.append(bih + bhh)                                      # f32 bias

    wdec_t = jax.random.uniform(ks[-2], (hidden, vocab), jnp.float32,
                                -bound, bound).astype(jnp.bfloat16)
    bdec = jax.random.uniform(ks[-1], (1, vocab), jnp.float32, -bound, bound)

    return {
        "emb": emb,
        "w_cat_t": jnp.stack(w_cat_t, axis=0),   # (n_layers, 2H, 4H) bf16
        "b": jnp.stack(b, axis=0),               # (n_layers, 1, 4H)  f32
        "wdec_t": wdec_t,                        # (H, V) bf16
        "bdec": bdec,                            # (1, V) f32
    }


# ---------------------------------- main ----------------------------------- #

if __name__ == "__main__":
    # Hardware-aligned small shapes: B multiple of 8 sublanes, H = 128 lanes,
    # V multiple of 128 so decoder tiles / stores are full lane tiles.
    BATCH = 8
    HIDDEN = 128
    N_LAYERS = 2
    VOCAB = 512

    key = jax.random.PRNGKey(0)
    k_params, k_ids, k_h, k_c = jax.random.split(key, 4)

    params = init_params(k_params, VOCAB, HIDDEN, N_LAYERS)

    input_ids = jax.random.randint(k_ids, (BATCH,), 0, VOCAB, dtype=jnp.int32)
    h0 = 0.1 * jax.random.normal(k_h, (N_LAYERS, BATCH, HIDDEN), jnp.float32)
    c0 = 0.1 * jax.random.normal(k_c, (N_LAYERS, BATCH, HIDDEN), jnp.float32)

    fwd = jax.jit(word_rnn_forward)
    logits, (h_new, c_new) = fwd(params, input_ids, (h0, c0))
    jax.block_until_ready((logits, h_new, c_new))

    assert logits.shape == (BATCH, VOCAB)
    assert h_new.shape == (N_LAYERS, BATCH, HIDDEN)
    assert c_new.shape == (N_LAYERS, BATCH, HIDDEN)
    assert bool(jnp.isfinite(logits).all())
    assert bool(jnp.isfinite(h_new).all())
    assert bool(jnp.isfinite(c_new).all())

    # Correctness vs. f32 reference on the same (bf16-stored) weights; bf16 MXU
    # operands give ~1e-2-level relative deviation, so compare with loose tolerance.
    ref_logits, (ref_h, ref_c) = word_rnn_reference(params, input_ids, (h0, c0))
    np.testing.assert_allclose(np.asarray(logits), np.asarray(ref_logits),
                               rtol=3e-2, atol=3e-2)
    np.testing.assert_allclose(np.asarray(h_new), np.asarray(ref_h),
                               rtol=3e-2, atol=3e-2)
    np.testing.assert_allclose(np.asarray(c_new), np.asarray(ref_c),
                               rtol=3e-2, atol=3e-2)

    print("KERNEL_OK")
</pallas_src>

<mosaic_0001>
module attributes {stable_mosaic.version = 11 : i64} {
  func.func @_fused_kernel(%arg0: i32, %arg1: memref<8xi32, #tpu.memory_space<smem>>, %arg2: memref<512x128xf32, #tpu.memory_space<any>>, %arg3: memref<1x8x128xf32, #tpu.memory_space<vmem>>, %arg4: memref<1x8x128xf32, #tpu.memory_space<vmem>>, %arg5: memref<1x256x512xbf16, #tpu.memory_space<vmem>>, %arg6: memref<1x1x512xf32, #tpu.memory_space<vmem>>, %arg7: memref<128x512xbf16, #tpu.memory_space<vmem>>, %arg8: memref<1x512xf32, #tpu.memory_space<vmem>>, %arg9: memref<1x8x128xf32, #tpu.memory_space<vmem>>, %arg10: memref<1x8x128xf32, #tpu.memory_space<vmem>>, %arg11: memref<8x512xf32, #tpu.memory_space<vmem>>, %arg12: memref<8x256xf32, #tpu.memory_space<vmem>>, %arg13: memref<8x128xbf16, #tpu.memory_space<vmem>>, %arg14: memref<!tpu.dma_semaphore, #tpu.memory_space<semaphore_mem>>) attributes {dimension_semantics = [#tpu.dimension_semantics<arbitrary>], iteration_bounds = array<i64: 3>, scalar_prefetch = 1 : i64, scratch_operands = 3 : i64, tpu.core_type = #tpu.core_type<tc>, window_params = [{}, {transform_indices = @transform_1, window_bounds = array<i64: 1, 8, 128>}, {transform_indices = @transform_2, window_bounds = array<i64: 1, 8, 128>}, {transform_indices = @transform_3, window_bounds = array<i64: 1, 256, 512>}, {transform_indices = @transform_4, window_bounds = array<i64: 1, 1, 512>}, {transform_indices = @transform_5, window_bounds = array<i64: 128, 512>}, {transform_indices = @transform_6, window_bounds = array<i64: 1, 512>}, {transform_indices = @transform_7, window_bounds = array<i64: 1, 8, 128>}, {transform_indices = @transform_8, window_bounds = array<i64: 1, 8, 128>}, {transform_indices = @transform_9, window_bounds = array<i64: 8, 512>}]} {
    %c2_i32 = arith.constant 2 : i32
    %0 = arith.cmpi slt, %arg0, %c2_i32 : i32
    %1 = arith.extui %0 : i1 to i32
    %c0_i32 = arith.constant 0 : i32
    %2 = arith.cmpi ne, %1, %c0_i32 : i32
    scf.if %2 {
      %c0_i32_2 = arith.constant 0 : i32
      %6 = arith.cmpi eq, %arg0, %c0_i32_2 : i32
      %7 = arith.extui %6 : i1 to i32
      %c0_i32_3 = arith.constant 0 : i32
      %8 = arith.cmpi ne, %7, %c0_i32_3 : i32
      scf.if %8 {
        %c0_30 = arith.constant 0 : index
        %58 = memref.load %arg1[%c0_30] : memref<8xi32, #tpu.memory_space<smem>>
        %c0_i32_31 = arith.constant 0 : i32
        %59 = arith.maxsi %58, %c0_i32_31 : i32
        %c511_i32 = arith.constant 511 : i32
        %60 = arith.minsi %59, %c511_i32 : i32
        %c0_i32_32 = arith.constant 0 : i32
        %61 = tpu.memref_slice %arg2[%60, %c0_i32_32] : memref<512x128xf32, #tpu.memory_space<any>> -> memref<1x128xf32, #tpu.memory_space<any>>
        %c0_i32_33 = arith.constant 0 : i32
        %c0_i32_34 = arith.constant 0 : i32
        %62 = tpu.memref_slice %arg12[%c0_i32_33, %c0_i32_34] : memref<8x256xf32, #tpu.memory_space<vmem>> -> memref<1x128xf32, #tpu.memory_space<vmem>>
        tpu.enqueue_dma source(%61 : memref<1x128xf32, #tpu.memory_space<any>>) target(%62 : memref<1x128xf32, #tpu.memory_space<vmem>>) target_semaphore(%arg14 : memref<!tpu.dma_semaphore, #tpu.memory_space<semaphore_mem>>)
        %c1 = arith.constant 1 : index
        %63 = memref.load %arg1[%c1] : memref<8xi32, #tpu.memory_space<smem>>
        %c0_i32_35 = arith.constant 0 : i32
        %64 = arith.maxsi %63, %c0_i32_35 : i32
        %c511_i32_36 = arith.constant 511 : i32
        %65 = arith.minsi %64, %c511_i32_36 : i32
        %c0_i32_37 = arith.constant 0 : i32
        %66 = tpu.memref_slice %arg2[%65, %c0_i32_37] : memref<512x128xf32, #tpu.memory_space<any>> -> memref<1x128xf32, #tpu.memory_space<any>>
        %c1_i32_38 = arith.constant 1 : i32
        %c0_i32_39 = arith.constant 0 : i32
        %67 = tpu.memref_slice %arg12[%c1_i32_38, %c0_i32_39] : memref<8x256xf32, #tpu.memory_space<vmem>> -> memref<1x128xf32, #tpu.memory_space<vmem>>
        tpu.enqueue_dma source(%66 : memref<1x128xf32, #tpu.memory_space<any>>) target(%67 : memref<1x128xf32, #tpu.memory_space<vmem>>) target_semaphore(%arg14 : memref<!tpu.dma_semaphore, #tpu.memory_space<semaphore_mem>>)
        %c2 = arith.constant 2 : index
        %68 = memref.load %arg1[%c2] : memref<8xi32, #tpu.memory_space<smem>>
        %c0_i32_40 = arith.constant 0 : i32
        %69 = arith.maxsi %68, %c0_i32_40 : i32
        %c511_i32_41 = arith.constant 511 : i32
        %70 = arith.minsi %69, %c511_i32_41 : i32
        %c0_i32_42 = arith.constant 0 : i32
        %71 = tpu.memref_slice %arg2[%70, %c0_i32_42] : memref<512x128xf32, #tpu.memory_space<any>> -> memref<1x128xf32, #tpu.memory_space<any>>
        %c2_i32_43 = arith.constant 2 : i32
        %c0_i32_44 = arith.constant 0 : i32
        %72 = tpu.memref_slice %arg12[%c2_i32_43, %c0_i32_44] : memref<8x256xf32, #tpu.memory_space<vmem>> -> memref<1x128xf32, #tpu.memory_space<vmem>>
        tpu.enqueue_dma source(%71 : memref<1x128xf32, #tpu.memory_space<any>>) target(%72 : memref<1x128xf32, #tpu.memory_space<vmem>>) target_semaphore(%arg14 : memref<!tpu.dma_semaphore, #tpu.memory_space<semaphore_mem>>)
        %c3 = arith.constant 3 : index
        %73 = memref.load %arg1[%c3] : memref<8xi32, #tpu.memory_space<smem>>
        %c0_i32_45 = arith.constant 0 : i32
        %74 = arith.maxsi %73, %c0_i32_45 : i32
        %c511_i32_46 = arith.constant 511 : i32
        %75 = arith.minsi %74, %c511_i32_46 : i32
        %c0_i32_47 = arith.constant 0 : i32
        %76 = tpu.memref_slice %arg2[%75, %c0_i32_47] : memref<512x128xf32, #tpu.memory_space<any>> -> memref<1x128xf32, #tpu.memory_space<any>>
        %c3_i32 = arith.constant 3 : i32
        %c0_i32_48 = arith.constant 0 : i32
        %77 = tpu.memref_slice %arg12[%c3_i32, %c0_i32_48] : memref<8x256xf32, #tpu.memory_space<vmem>> -> memref<1x128xf32, #tpu.memory_space<vmem>>
        tpu.enqueue_dma source(%76 : memref<1x128xf32, #tpu.memory_space<any>>) target(%77 : memref<1x128xf32, #tpu.memory_space<vmem>>) target_semaphore(%arg14 : memref<!tpu.dma_semaphore, #tpu.memory_space<semaphore_mem>>)
        %c4 = arith.constant 4 : index
        %78 = memref.load %arg1[%c4] : memref<8xi32, #tpu.memory_space<smem>>
        %c0_i32_49 = arith.constant 0 : i32
        %79 = arith.maxsi %78, %c0_i32_49 : i32
        %c511_i32_50 = arith.constant 511 : i32
        %80 = arith.minsi %79, %c511_i32_50 : i32
        %c0_i32_51 = arith.constant 0 : i32
        %81 = tpu.memref_slice %arg2[%80, %c0_i32_51] : memref<512x128xf32, #tpu.memory_space<any>> -> memref<1x128xf32, #tpu.memory_space<any>>
        %c4_i32 = arith.constant 4 : i32
        %c0_i32_52 = arith.constant 0 : i32
        %82 = tpu.memref_slice %arg12[%c4_i32, %c0_i32_52] : memref<8x256xf32, #tpu.memory_space<vmem>> -> memref<1x128xf32, #tpu.memory_space<vmem>>
        tpu.enqueue_dma source(%81 : memref<1x128xf32, #tpu.memory_space<any>>) target(%82 : memref<1x128xf32, #tpu.memory_space<vmem>>) target_semaphore(%arg14 : memref<!tpu.dma_semaphore, #tpu.memory_space<semaphore_mem>>)
        %c5 = arith.constant 5 : index
        %83 = memref.load %arg1[%c5] : memref<8xi32, #tpu.memory_space<smem>>
        %c0_i32_53 = arith.constant 0 : i32
        %84 = arith.maxsi %83, %c0_i32_53 : i32
        %c511_i32_54 = arith.constant 511 : i32
        %85 = arith.minsi %84, %c511_i32_54 : i32
        %c0_i32_55 = arith.constant 0 : i32
        %86 = tpu.memref_slice %arg2[%85, %c0_i32_55] : memref<512x128xf32, #tpu.memory_space<any>> -> memref<1x128xf32, #tpu.memory_space<any>>
        %c5_i32 = arith.constant 5 : i32
        %c0_i32_56 = arith.constant 0 : i32
        %87 = tpu.memref_slice %arg12[%c5_i32, %c0_i32_56] : memref<8x256xf32, #tpu.memory_space<vmem>> -> memref<1x128xf32, #tpu.memory_space<vmem>>
        tpu.enqueue_dma source(%86 : memref<1x128xf32, #tpu.memory_space<any>>) target(%87 : memref<1x128xf32, #tpu.memory_space<vmem>>) target_semaphore(%arg14 : memref<!tpu.dma_semaphore, #tpu.memory_space<semaphore_mem>>)
        %c6 = arith.constant 6 : index
        %88 = memref.load %arg1[%c6] : memref<8xi32, #tpu.memory_space<smem>>
        %c0_i32_57 = arith.constant 0 : i32
        %89 = arith.maxsi %88, %c0_i32_57 : i32
        %c511_i32_58 = arith.constant 511 : i32
        %90 = arith.minsi %89, %c511_i32_58 : i32
        %c0_i32_59 = arith.constant 0 : i32
        %91 = tpu.memref_slice %arg2[%90, %c0_i32_59] : memref<512x128xf32, #tpu.memory_space<any>> -> memref<1x128xf32, #tpu.memory_space<any>>
        %c6_i32 = arith.constant 6 : i32
        %c0_i32_60 = arith.constant 0 : i32
        %92 = tpu.memref_slice %arg12[%c6_i32, %c0_i32_60] : memref<8x256xf32, #tpu.memory_space<vmem>> -> memref<1x128xf32, #tpu.memory_space<vmem>>
        tpu.enqueue_dma source(%91 : memref<1x128xf32, #tpu.memory_space<any>>) target(%92 : memref<1x128xf32, #tpu.memory_space<vmem>>) target_semaphore(%arg14 : memref<!tpu.dma_semaphore, #tpu.memory_space<semaphore_mem>>)
        %c7 = arith.constant 7 : index
        %93 = memref.load %arg1[%c7] : memref<8xi32, #tpu.memory_space<smem>>
        %c0_i32_61 = arith.constant 0 : i32
        %94 = arith.maxsi %93, %c0_i32_61 : i32
        %c511_i32_62 = arith.constant 511 : i32
        %95 = arith.minsi %94, %c511_i32_62 : i32
        %c0_i32_63 = arith.constant 0 : i32
        %96 = tpu.memref_slice %arg2[%95, %c0_i32_63] : memref<512x128xf32, #tpu.memory_space<any>> -> memref<1x128xf32, #tpu.memory_space<any>>
        %c7_i32 = arith.constant 7 : i32
        %c0_i32_64 = arith.constant 0 : i32
        %97 = tpu.memref_slice %arg12[%c7_i32, %c0_i32_64] : memref<8x256xf32, #tpu.memory_space<vmem>> -> memref<1x128xf32, #tpu.memory_space<vmem>>
        tpu.enqueue_dma source(%96 : memref<1x128xf32, #tpu.memory_space<any>>) target(%97 : memref<1x128xf32, #tpu.memory_space<vmem>>) target_semaphore(%arg14 : memref<!tpu.dma_semaphore, #tpu.memory_space<semaphore_mem>>)
        %c0_i32_65 = arith.constant 0 : i32
        %98 = tpu.memref_slice %arg2[%60, %c0_i32_65] : memref<512x128xf32, #tpu.memory_space<any>> -> memref<1x128xf32, #tpu.memory_space<any>>
        %c0_i32_66 = arith.constant 0 : i32
        %c0_i32_67 = arith.constant 0 : i32
        %99 = tpu.memref_slice %arg12[%c0_i32_66, %c0_i32_67] : memref<8x256xf32, #tpu.memory_space<vmem>> -> memref<1x128xf32, #tpu.memory_space<vmem>>
        tpu.wait_dma2 semaphore(%arg14 : memref<!tpu.dma_semaphore, #tpu.memory_space<semaphore_mem>>) src(%98 : memref<1x128xf32, #tpu.memory_space<any>>) dst(%99 : memref<1x128xf32, #tpu.memory_space<vmem>>)
        %c0_i32_68 = arith.constant 0 : i32
        %100 = tpu.memref_slice %arg2[%65, %c0_i32_68] : memref<512x128xf32, #tpu.memory_space<any>> -> memref<1x128xf32, #tpu.memory_space<any>>
        %c1_i32_69 = arith.constant 1 : i32
        %c0_i32_70 = arith.constant 0 : i32
        %101 = tpu.memref_slice %arg12[%c1_i32_69, %c0_i32_70] : memref<8x256xf32, #tpu.memory_space<vmem>> -> memref<1x128xf32, #tpu.memory_space<vmem>>
        tpu.wait_dma2 semaphore(%arg14 : memref<!tpu.dma_semaphore, #tpu.memory_space<semaphore_mem>>) src(%100 : memref<1x128xf32, #tpu.memory_space<any>>) dst(%101 : memref<1x128xf32, #tpu.memory_space<vmem>>)
        %c0_i32_71 = arith.constant 0 : i32
        %102 = tpu.memref_slice %arg2[%70, %c0_i32_71] : memref<512x128xf32, #tpu.memory_space<any>> -> memref<1x128xf32, #tpu.memory_space<any>>
        %c2_i32_72 = arith.constant 2 : i32
        %c0_i32_73 = arith.constant 0 : i32
        %103 = tpu.memref_slice %arg12[%c2_i32_72, %c0_i32_73] : memref<8x256xf32, #tpu.memory_space<vmem>> -> memref<1x128xf32, #tpu.memory_space<vmem>>
        tpu.wait_dma2 semaphore(%arg14 : memref<!tpu.dma_semaphore, #tpu.memory_space<semaphore_mem>>) src(%102 : memref<1x128xf32, #tpu.memory_space<any>>) dst(%103 : memref<1x128xf32, #tpu.memory_space<vmem>>)
        %c0_i32_74 = arith.constant 0 : i32
        %104 = tpu.memref_slice %arg2[%75, %c0_i32_74] : memref<512x128xf32, #tpu.memory_space<any>> -> memref<1x128xf32, #tpu.memory_space<any>>
        %c3_i32_75 = arith.constant 3 : i32
        %c0_i32_76 = arith.constant 0 : i32
        %105 = tpu.memref_slice %arg12[%c3_i32_75, %c0_i32_76] : memref<8x256xf32, #tpu.memory_space<vmem>> -> memref<1x128xf32, #tpu.memory_space<vmem>>
        tpu.wait_dma2 semaphore(%arg14 : memref<!tpu.dma_semaphore, #tpu.memory_space<semaphore_mem>>) src(%104 : memref<1x128xf32, #tpu.memory_space<any>>) dst(%105 : memref<1x128xf32, #tpu.memory_space<vmem>>)
        %c0_i32_77 = arith.constant 0 : i32
        %106 = tpu.memref_slice %arg2[%80, %c0_i32_77] : memref<512x128xf32, #tpu.memory_space<any>> -> memref<1x128xf32, #tpu.memory_space<any>>
        %c4_i32_78 = arith.constant 4 : i32
        %c0_i32_79 = arith.constant 0 : i32
        %107 = tpu.memref_slice %arg12[%c4_i32_78, %c0_i32_79] : memref<8x256xf32, #tpu.memory_space<vmem>> -> memref<1x128xf32, #tpu.memory_space<vmem>>
        tpu.wait_dma2 semaphore(%arg14 : memref<!tpu.dma_semaphore, #tpu.memory_space<semaphore_mem>>) src(%106 : memref<1x128xf32, #tpu.memory_space<any>>) dst(%107 : memref<1x128xf32, #tpu.memory_space<vmem>>)
        %c0_i32_80 = arith.constant 0 : i32
        %108 = tpu.memref_slice %arg2[%85, %c0_i32_80] : memref<512x128xf32, #tpu.memory_space<any>> -> memref<1x128xf32, #tpu.memory_space<any>>
        %c5_i32_81 = arith.constant 5 : i32
        %c0_i32_82 = arith.constant 0 : i32
        %109 = tpu.memref_slice %arg12[%c5_i32_81, %c0_i32_82] : memref<8x256xf32, #tpu.memory_space<vmem>> -> memref<1x128xf32, #tpu.memory_space<vmem>>
        tpu.wait_dma2 semaphore(%arg14 : memref<!tpu.dma_semaphore, #tpu.memory_space<semaphore_mem>>) src(%108 : memref<1x128xf32, #tpu.memory_space<any>>) dst(%109 : memref<1x128xf32, #tpu.memory_space<vmem>>)
        %c0_i32_83 = arith.constant 0 : i32
        %110 = tpu.memref_slice %arg2[%90, %c0_i32_83] : memref<512x128xf32, #tpu.memory_space<any>> -> memref<1x128xf32, #tpu.memory_space<any>>
        %c6_i32_84 = arith.constant 6 : i32
        %c0_i32_85 = arith.constant 0 : i32
        %111 = tpu.memref_slice %arg12[%c6_i32_84, %c0_i32_85] : memref<8x256xf32, #tpu.memory_space<vmem>> -> memref<1x128xf32, #tpu.memory_space<vmem>>
        tpu.wait_dma2 semaphore(%arg14 : memref<!tpu.dma_semaphore, #tpu.memory_space<semaphore_mem>>) src(%110 : memref<1x128xf32, #tpu.memory_space<any>>) dst(%111 : memref<1x128xf32, #tpu.memory_space<vmem>>)
        %c0_i32_86 = arith.constant 0 : i32
        %112 = tpu.memref_slice %arg2[%95, %c0_i32_86] : memref<512x128xf32, #tpu.memory_space<any>> -> memref<1x128xf32, #tpu.memory_space<any>>
        %c7_i32_87 = arith.constant 7 : i32
        %c0_i32_88 = arith.constant 0 : i32
        %113 = tpu.memref_slice %arg12[%c7_i32_87, %c0_i32_88] : memref<8x256xf32, #tpu.memory_space<vmem>> -> memref<1x128xf32, #tpu.memory_space<vmem>>
        tpu.wait_dma2 semaphore(%arg14 : memref<!tpu.dma_semaphore, #tpu.memory_space<semaphore_mem>>) src(%112 : memref<1x128xf32, #tpu.memory_space<any>>) dst(%113 : memref<1x128xf32, #tpu.memory_space<vmem>>)
      } else {
      }
      %c0 = arith.constant 0 : index
      %c0_4 = arith.constant 0 : index
      %c0_5 = arith.constant 0 : index
      %9 = vector.load %arg4[%c0, %c0_4, %c0_5] : memref<1x8x128xf32, #tpu.memory_space<vmem>>, vector<1x8x128xf32>
      %10 = vector.shape_cast %9 : vector<1x8x128xf32> to vector<8x128xf32>
      %c0_6 = arith.constant 0 : index
      %c0_7 = arith.constant 0 : index
      %c0_8 = arith.constant 0 : index
      %11 = vector.load %arg3[%c0_6, %c0_7, %c0_8] : memref<1x8x128xf32, #tpu.memory_space<vmem>>, vector<1x8x128xf32>
      %12 = vector.shape_cast %11 : vector<1x8x128xf32> to vector<8x128xf32>
      %c0_9 = arith.constant 0 : index
      %c128 = arith.constant 128 : index
      %13 = vector.load %arg12[%c0_9, %c128] : memref<8x256xf32, #tpu.memory_space<vmem>>, vector<8x128xf32>
      tpu.vector_store %arg12[%c0_9, %c128], %12 {strides = array<i32>} : memref<8x256xf32, #tpu.memory_space<vmem>>, vector<8x128xf32>,
      %c0_10 = arith.constant 0 : index
      %c0_11 = arith.constant 0 : index
      %14 = vector.load %arg12[%c0_10, %c0_11] : memref<8x256xf32, #tpu.memory_space<vmem>>, vector<8x256xf32>
      %15 = arith.truncf %14 : vector<8x256xf32> to vector<8x256xbf16>
      %c0_12 = arith.constant 0 : index
      %c0_13 = arith.constant 0 : index
      %c0_14 = arith.constant 0 : index
      %16 = vector.load %arg5[%c0_12, %c0_13, %c0_14] : memref<1x256x512xbf16, #tpu.memory_space<vmem>>, vector<1x256x512xbf16>
      %17 = vector.shape_cast %16 : vector<1x256x512xbf16> to vector<256x512xbf16>
      %cst = arith.constant dense<0.000000e+00> : vector<8x512xf32>
      %18 = tpu.matmul %15, %17, %cst {dimension_numbers = #tpu.dot_dimension_numbers<[1], [0], [0], [1], [0, 0, 1, 1], [], []>} : vector<8x256xbf16>, vector<256x512xbf16>, vector<8x512xf32> -> vector<8x512xf32>
      %c0_15 = arith.constant 0 : index
      %c0_16 = arith.constant 0 : index
      %c0_17 = arith.constant 0 : index
      %19 = vector.load %arg6[%c0_15, %c0_16, %c0_17] : memref<1x1x512xf32, #tpu.memory_space<vmem>>, vector<1x1x512xf32>
      %20 = vector.shape_cast %19 : vector<1x1x512xf32> to vector<1x512xf32>
      %21 = vector.broadcast %20 : vector<1x512xf32> to vector<8x512xf32>
      %22 = arith.addf %18, %21 : vector<8x512xf32>
      %23 = vector.extract_strided_slice %22 {offsets = [0, 0], sizes = [8, 128], strides = [1, 1]} : vector<8x512xf32> to vector<8x128xf32>
      %24 = arith.negf %23 : vector<8x128xf32>
      %25 = math.exp %24 : vector<8x128xf32>
      %cst_18 = arith.constant 1.000000e+00 : f32
      %26 = vector.broadcast %cst_18 : f32 to vector<8x128xf32>
      %27 = arith.addf %26, %25 : vector<8x128xf32>
      %28 = arith.divf %26, %27 : vector<8x128xf32>
      %29 = vector.extract_strided_slice %22 {offsets = [0, 128], sizes = [8, 128], strides = [1, 1]} : vector<8x512xf32> to vector<8x128xf32>
      %30 = arith.negf %29 : vector<8x128xf32>
      %31 = math.exp %30 : vector<8x128xf32>
      %cst_19 = arith.constant 1.000000e+00 : f32
      %32 = vector.broadcast %cst_19 : f32 to vector<8x128xf32>
      %33 = arith.addf %32, %31 : vector<8x128xf32>
      %34 = arith.divf %32, %33 : vector<8x128xf32>
      %35 = vector.extract_strided_slice %22 {offsets = [0, 256], sizes = [8, 128], strides = [1, 1]} : vector<8x512xf32> to vector<8x128xf32>
      %36 = math.tanh %35 : vector<8x128xf32>
      %37 = vector.extract_strided_slice %22 {offsets = [0, 384], sizes = [8, 128], strides = [1, 1]} : vector<8x512xf32> to vector<8x128xf32>
      %38 = arith.negf %37 : vector<8x128xf32>
      %39 = math.exp %38 : vector<8x128xf32>
      %cst_20 = arith.constant 1.000000e+00 : f32
      %40 = vector.broadcast %cst_20 : f32 to vector<8x128xf32>
      %41 = arith.addf %40, %39 : vector<8x128xf32>
      %42 = arith.divf %40, %41 : vector<8x128xf32>
      %43 = arith.mulf %34, %10 : vector<8x128xf32>
      %44 = arith.mulf %28, %36 : vector<8x128xf32>
      %45 = arith.addf %43, %44 : vector<8x128xf32>
      %46 = math.tanh %45 : vector<8x128xf32>
      %47 = arith.mulf %42, %46 : vector<8x128xf32>
      %c0_21 = arith.constant 0 : index
      %c0_22 = arith.constant 0 : index
      %c0_23 = arith.constant 0 : index
      %48 = vector.load %arg9[%c0_21, %c0_22, %c0_23] : memref<1x8x128xf32, #tpu.memory_space<vmem>>, vector<1x8x128xf32>
      %49 = vector.shape_cast %48 : vector<1x8x128xf32> to vector<8x128xf32>
      %50 = vector.shape_cast %47 : vector<8x128xf32> to vector<1x8x128xf32>
      tpu.vector_store %arg9[%c0_21, %c0_22, %c0_23], %50 {strides = array<i32>} : memref<1x8x128xf32, #tpu.memory_space<vmem>>, vector<1x8x128xf32>,
      %c0_24 = arith.constant 0 : index
      %c0_25 = arith.constant 0 : index
      %c0_26 = arith.constant 0 : index
      %51 = vector.load %arg10[%c0_24, %c0_25, %c0_26] : memref<1x8x128xf32, #tpu.memory_space<vmem>>, vector<1x8x128xf32>
      %52 = vector.shape_cast %51 : vector<1x8x128xf32> to vector<8x128xf32>
      %53 = vector.shape_cast %45 : vector<8x128xf32> to vector<1x8x128xf32>
      tpu.vector_store %arg10[%c0_24, %c0_25, %c0_26], %53 {strides = array<i32>} : memref<1x8x128xf32, #tpu.memory_space<vmem>>, vector<1x8x128xf32>,
      %c0_27 = arith.constant 0 : index
      %c0_28 = arith.constant 0 : index
      %54 = vector.load %arg12[%c0_27, %c0_28] : memref<8x256xf32, #tpu.memory_space<vmem>>, vector<8x128xf32>
      tpu.vector_store %arg12[%c0_27, %c0_28], %47 {strides = array<i32>} : memref<8x256xf32, #tpu.memory_space<vmem>>, vector<8x128xf32>,
      %c1_i32 = arith.constant 1 : i32
      %55 = arith.cmpi eq, %arg0, %c1_i32 : i32
      %56 = arith.extui %55 : i1 to i32
      %c0_i32_29 = arith.constant 0 : i32
      %57 = arith.cmpi ne, %56, %c0_i32_29 : i32
      scf.if %57 {
        %58 = arith.truncf %47 : vector<8x128xf32> to vector<8x128xbf16>
        %c0_30 = arith.constant 0 : index
        %c0_31 = arith.constant 0 : index
        %59 = vector.load %arg13[%c0_30, %c0_31] : memref<8x128xbf16, #tpu.memory_space<vmem>>, vector<8x128xbf16>
        tpu.vector_store %arg13[%c0_30, %c0_31], %58 {strides = array<i32>} : memref<8x128xbf16, #tpu.memory_space<vmem>>, vector<8x128xbf16>,
      } else {
      }
    } else {
    }
    %c2_i32_0 = arith.constant 2 : i32
    %3 = arith.cmpi sge, %arg0, %c2_i32_0 : i32
    %4 = arith.extui %3 : i1 to i32
    %c0_i32_1 = arith.constant 0 : i32
    %5 = arith.cmpi ne, %4, %c0_i32_1 : i32
    scf.if %5 {
      %c0 = arith.constant 0 : index
      %c0_2 = arith.constant 0 : index
      %6 = vector.load %arg13[%c0, %c0_2] : memref<8x128xbf16, #tpu.memory_space<vmem>>, vector<8x128xbf16>
      %c0_3 = arith.constant 0 : index
      %c0_4 = arith.constant 0 : index
      %7 = vector.load %arg7[%c0_3, %c0_4] : memref<128x512xbf16, #tpu.memory_space<vmem>>, vector<128x512xbf16>
      %cst = arith.constant dense<0.000000e+00> : vector<8x512xf32>
      %8 = tpu.matmul %6, %7, %cst {dimension_numbers = #tpu.dot_dimension_numbers<[1], [0], [0], [1], [0, 0, 1, 1], [], []>} : vector<8x128xbf16>, vector<128x512xbf16>, vector<8x512xf32> -> vector<8x512xf32>
      %c0_5 = arith.constant 0 : index
      %c0_6 = arith.constant 0 : index
      %9 = vector.load %arg8[%c0_5, %c0_6] : memref<1x512xf32, #tpu.memory_space<vmem>>, vector<1x512xf32>
      %10 = vector.broadcast %9 : vector<1x512xf32> to vector<8x512xf32>
      %11 = arith.addf %8, %10 : vector<8x512xf32>
      %c0_7 = arith.constant 0 : index
      %c0_8 = arith.constant 0 : index
      %12 = vector.load %arg11[%c0_7, %c0_8] : memref<8x512xf32, #tpu.memory_space<vmem>>, vector<8x512xf32>
      tpu.vector_store %arg11[%c0_7, %c0_8], %11 {strides = array<i32>} : memref<8x512xf32, #tpu.memory_space<vmem>>, vector<8x512xf32>,
    } else {
    }
    return
  }
  func.func @transform_1(%arg0: i32, %arg1: memref<8xi32, #tpu.memory_space<smem>>) -> (i32, i32, i32) {
    %c1_i32 = arith.constant 1 : i32
    %0 = arith.minsi %arg0, %c1_i32 : i32
    %c0_i32 = arith.constant 0 : i32
    %c0_i32_0 = arith.constant 0 : i32
    %c0_i32_1 = arith.constant 0 : i32
    return %0, %c0_i32, %c0_i32_0 : i32, i32, i32
  }
  func.func @transform_2(%arg0: i32, %arg1: memref<8xi32, #tpu.memory_space<smem>>) -> (i32, i32, i32) {
    %c1_i32 = arith.constant 1 : i32
    %0 = arith.minsi %arg0, %c1_i32 : i32
    %c0_i32 = arith.constant 0 : i32
    %c0_i32_0 = arith.constant 0 : i32
    %c0_i32_1 = arith.constant 0 : i32
    return %0, %c0_i32, %c0_i32_0 : i32, i32, i32
  }
  func.func @transform_3(%arg0: i32, %arg1: memref<8xi32, #tpu.memory_space<smem>>) -> (i32, i32, i32) {
    %c1_i32 = arith.constant 1 : i32
    %0 = arith.minsi %arg0, %c1_i32 : i32
    %c0_i32 = arith.constant 0 : i32
    %c0_i32_0 = arith.constant 0 : i32
    %c0_i32_1 = arith.constant 0 : i32
    return %0, %c0_i32, %c0_i32_0 : i32, i32, i32
  }
  func.func @transform_4(%arg0: i32, %arg1: memref<8xi32, #tpu.memory_space<smem>>) -> (i32, i32, i32) {
    %c1_i32 = arith.constant 1 : i32
    %0 = arith.minsi %arg0, %c1_i32 : i32
    %c0_i32 = arith.constant 0 : i32
    %c0_i32_0 = arith.constant 0 : i32
    %c0_i32_1 = arith.constant 0 : i32
    return %0, %c0_i32, %c0_i32_0 : i32, i32, i32
  }
  func.func @transform_5(%arg0: i32, %arg1: memref<8xi32, #tpu.memory_space<smem>>) -> (i32, i32) {
    %c2_i32 = arith.constant 2 : i32
    %0 = arith.subi %arg0, %c2_i32 : i32
    %c0_i32 = arith.constant 0 : i32
    %1 = arith.maxsi %0, %c0_i32 : i32
    %c0_i32_0 = arith.constant 0 : i32
    %c0_i32_1 = arith.constant 0 : i32
    return %c0_i32_0, %1 : i32, i32
  }
  func.func @transform_6(%arg0: i32, %arg1: memref<8xi32, #tpu.memory_space<smem>>) -> (i32, i32) {
    %c2_i32 = arith.constant 2 : i32
    %0 = arith.subi %arg0, %c2_i32 : i32
    %c0_i32 = arith.constant 0 : i32
    %1 = arith.maxsi %0, %c0_i32 : i32
    %c0_i32_0 = arith.constant 0 : i32
    %c0_i32_1 = arith.constant 0 : i32
    return %c0_i32_0, %1 : i32, i32
  }
  func.func @transform_7(%arg0: i32, %arg1: memref<8xi32, #tpu.memory_space<smem>>) -> (i32, i32, i32) {
    %c1_i32 = arith.constant 1 : i32
    %0 = arith.minsi %arg0, %c1_i32 : i32
    %c0_i32 = arith.constant 0 : i32
    %c0_i32_0 = arith.constant 0 : i32
    %c0_i32_1 = arith.constant 0 : i32
    return %0, %c0_i32, %c0_i32_0 : i32, i32, i32
  }
  func.func @transform_8(%arg0: i32, %arg1: memref<8xi32, #tpu.memory_space<smem>>) -> (i32, i32, i32) {
    %c1_i32 = arith.constant 1 : i32
    %0 = arith.minsi %arg0, %c1_i32 : i32
    %c0_i32 = arith.constant 0 : i32
    %c0_i32_0 = arith.constant 0 : i32
    %c0_i32_1 = arith.constant 0 : i32
    return %0, %c0_i32, %c0_i32_0 : i32, i32, i32
  }
  func.func @transform_9(%arg0: i32, %arg1: memref<8xi32, #tpu.memory_space<smem>>) -> (i32, i32) {
    %c2_i32 = arith.constant 2 : i32
    %0 = arith.subi %arg0, %c2_i32 : i32
    %c0_i32 = arith.constant 0 : i32
    %1 = arith.maxsi %0, %c0_i32 : i32
    %c0_i32_0 = arith.constant 0 : i32
    %c0_i32_1 = arith.constant 0 : i32
    return %c0_i32_0, %1 : i32, i32
  }
}

</mosaic_0001>

<bundles_post_ra>
// kernel: word_rnn_forward.1
= control target key start
LH: loop header
LB: loop body
LE: loop exit
PB: predicated region body
PF: predicated region fallthrough
CT: control target
= control target key end

     0   :  { %s3887_s0 = inlined_call_operand.vmem [shape: s32[8], index: 0, kind: input, shape index: {}]   ;;  %s3888_s1 = inlined_call_operand.hbm [shape: f32[512,128], index: 1, kind: input, shape index: {}]   ;;  %s3889_s2 = inlined_call_operand.vmem [shape: f32[2,8,128], index: 2, kind: input, shape index: {}]   ;;  %s3890_s3 = inlined_call_operand.hbm [shape: f32[2,8,128], index: 3, kind: input, shape index: {}]   ;;  %s3891_s4 = inlined_call_operand.hbm [shape: bf16[2,256,512], index: 4, kind: input, shape index: {}]   ;;  %s3892_s5 = inlined_call_operand.hbm [shape: f32[2,1,512], index: 5, kind: input, shape index: {}]   ;;  %s3893_s6 = inlined_call_operand.hbm [shape: bf16[128,512], index: 6, kind: input, shape index: {}]   ;;  %s3894_s7 = inlined_call_operand.hbm [shape: f32[1,512], index: 7, kind: input, shape index: {}]   ;;  %s3895_s8 = inlined_call_operand.hbm [shape: f32[2,8,128], index: 8, kind: output, shape index: {0}]   ;;  %s3896_s9 = inlined_call_operand.hbm [shape: f32[2,8,128], index: 9, kind: output, shape index: {1}]   ;;  %s3897_s10 = inlined_call_operand.hbm [shape: f32[8,512], index: 10, kind: output, shape index: {2}]  }
   0x1   :  { %3936 = sst [smem:[#allocation60_spill]] %s3888_s1  ;;  %s16_s15 = sshll.u32 %s3887_s0, 4  ;;  %s17_s15 = int_to_ptr.vmem [resolvable:$true] %s16_s15 }
   0x2   :  { %3937 = sst [smem:[#allocation61_spill]] %s3889_s2  ;;  %s2430_s16 = scalar_lea.vmem %s17_s15, 16 }
   0x3   :  { %3938 = sst [smem:[#allocation62_spill]] %s3890_s3  ;;  %p2431_p0 = scmp.ne.s32.totalorder %s17_s15, %s2430_s16 }
   0x4   :  { %3939 = sst [smem:[#allocation63_spill]] %s3891_s4  ;;  %p2435_p1 = scmp.lt.s32.totalorder %s17_s15, %s17_s15 }
   0x5   :  { %3940 = sst [smem:[#allocation64_spill]] %s3892_s5  ;;  %p2436_p2 = scmp.lt.s32.totalorder %s2430_s16, %s2430_s16 }
   0x6   :  { %3941 = sst [smem:[#allocation65_spill]] %s3893_s6 }
   0x7   :  { %3942 = sst [smem:[#allocation66_spill]] %s3894_s7  ;;  %p2437_p3 = por %p2436_p2, %p2435_p1 }
   0x8   :  { %3943 = sst [smem:[#allocation67_spill]] %s3895_s8 }
   0x9   :  { %3944 = sst [smem:[#allocation68_spill]] %s3896_s9  ;;  %p2438_p4 = pnand %p2437_p3, %p2431_p0 }
   0xa   :  { %3945 = sst [smem:[#allocation69_spill]] %s3897_s10 }
   0xb   :  { %2441 = shalt.err (!%p2438_p4)  }
   0xc   :  { %s2986_s17 = smov [#allocation6]  }
   0xd   :  { %19 = dma.vmem_to_smem %s17_s15, 16, %s2986_s17, [#allocation5] }
   0xe   :  { %2928 = dma.done.wait [#allocation5], 16 }
   0xf   :  { %2929 = vsyncadd [#allocation5], 4294967280 }
  0x10   :  { %21 = sfence }
  0x11   :  { %22 = vsyncpa [#allocation8], 0 }
  0x12   :  { %24 = vsyncpa [#allocation8 + $0x1], 0 }
  0x13   :  { %25 = vsyncpa [#allocation11], 0 }
  0x14   :  { %27 = vsyncpa [#allocation11 + $0x1], 0 }
  0x15   :  { %28 = vsyncpa [#allocation14], 0 }
  0x16   :  { %30 = vsyncpa [#allocation14 + $0x1], 0 }
  0x17   :  { %31 = vsyncpa [#allocation9], 0 }
  0x18   :  { %33 = vsyncpa [#allocation9 + $0x1], 0 }
  0x19   :  { %34 = vsyncpa [#allocation18], 0 }
  0x1a   :  { %36 = vsyncpa [#allocation18 + $0x1], 0  ;;  %s3064_s0 = smov 0   ;;  %s3066_s18 = smov 0  }
  0x1b   :  { %s3068_s19 = smov 0   ;;  %s3070_s20 = smov 0  }
  0x1c   :  { %s3072_s21 = smov 0   ;;  %s3074_s22 = smov 0  }
  0x1d   :  { %s3076_s23 = smov 0  }
  0x1e LB: > { %3946 = sst [smem:[#allocation46_spill]] %s2968_s19  ;;  %s3100_s24 = sadd.s32 1, %s2984_s23   ;;  %s2984_s23 = sphi %s3076_s23, %s4046_s23   ;;  %s2980_s22 = sphi %s3074_s22, %s4051_s22   ;;  %s2976_s21 = sphi %s3072_s21, %s4050_s21   ;;  %s2972_s20 = sphi %s3070_s20, %s4049_s20   ;;  %s2968_s19 = sphi %s3068_s19, %s4048_s19   ;;  %s2964_s18 = sphi %s3066_s18, %s4053_s18   ;;  %s2960_s0 = sphi %s3064_s0, %s4052_s0  }
  0x1f   : > { %3947 = sst [smem:[#allocation47_spill]] %s2972_s20  ;;  %p76_p5 = scmp.lt.s32.totalorder %s2984_s23, 1 }
  0x20   : > { %3948 = sst [smem:[#allocation48_spill]] %s2976_s21  ;;  %p78_p6 = scmp.lt.s32.totalorder %s3100_s24, 1 }
  0x21   : > { %3949 = sst [smem:[#allocation49_spill]] %s2980_s22  ;;  %s83_s25 = sadd.s32 1, %s2980_s22 }
  0x22   : > { %3950 = sst [smem:[#allocation50_spill]] %s2984_s23  ;;  %p3901_p7 = scmp.ne.s32.totalorder %s2980_s22, %s2976_s21 }
  0x23   : > { %3951 = sst [smem:[#allocation51_spill]] %s3100_s24  ;;  %p3902_p8 = scmp.eq.s32.totalorder %s2984_s23, 0 }
  0x24   : > { %s3106_s26 = scalar_select %p76_p5, %s2984_s23, 1 }
  0x25   : > { %s79_s27 = scalar_select %p78_p6, %s3100_s24, 1 }
  0x26   : > { %p92_p10 = por %p3902_p8, %p3901_p7  ;;  %p3900_p11 = scmp.lt.s32.totalorder %s2984_s23, 3 }
  0x27   : > { %s80_s28 = ssub.s32 %s3106_s26, %s79_s27  ;;  %s3120_s29 = sand.u32 1, %s2980_s22  }
  0x28   : > { %p81_p9 = scmp.eq.s32.totalorder %s80_s28, 0  ;;  %p3127_p12 = pnand %p3900_p11, %p92_p10 }
  0x29   : > { %s3899_s12 = sand.u32 1, %s2984_s23   ;;  %s1930_s13 = sshll.u32 %s3120_s29, 9 }
  0x2a   : > { %s3123_s30 = scalar_select %p81_p9, %s2980_s22, %s83_s25  }
  0x2b   : > { %s3953_s11 = scalar_select %p3127_p12, 1, 0 }
  0x2c   : > { %3952 = sst [smem:[#allocation52_spill]] %s3123_s30  ;;  %s2126_s14 = sshll.u32 %s3106_s26, 13 }
  0x2d   : > { %s371_s15 = scalar_lea.vmem [#allocation10], %s1930_s13  ;;  %s3954_s4 = sld [smem:[#allocation63_spill]] }
  0x2e   : > { %s380_s16 = sshll.u32 %s371_s15, 4  ;;  %s3143_s25 = scalar_lea.sflag [#allocation11], %s3899_s12  ;;  %s3139_s16 = int_to_ptr.vmem [resolvable:$true] %s380_s16 }
  0x2f   : > { %p3149_p0 = pneg %p3127_p12 }
  0x33   : > { %s3137_s28 = scalar_lea.hbm %s3954_s4, %s2126_s14  ;;  %s2447_s17 = scalar_lea.hbm %s3954_s4, 16384 }
  0x34   : > { %s2442_s30 = scalar_lea.hbm %s3137_s28, 8192  ;;  %p2448_p3 = scmp.lt.u32.totalorder %s3137_s28, %s3954_s4 }
  0x35   : > { %p2443_p13 = scmp.ne.s32.totalorder %s3137_s28, %s2442_s30  ;;  %p2449_p4 = scmp.lt.u32.totalorder %s2447_s17, %s2442_s30 }
  0x36   : > { %p2451_p6 = scmp.lt.u32.totalorder %s2442_s30, %s3137_s28 }
  0x37   : > { %p2445_p1 = pnand %p3149_p0, %p2443_p13  ;;  %p2450_p5 = por %p2449_p4, %p2448_p3 }
  0x39   : > { %p2446_p2 = pneg %p2445_p1  ;;  %p2452_p9 = por %p2451_p6, %p2450_p5 }
  0x3b   : > { %p2453_p10 = pnand %p2452_p9, %p2446_p2 }
  0x3d   : > { %2456 = shalt.err (!%p2453_p10)
}
  0x3e   : > { %s2457_s12 = scalar_lea.vmem %s3139_s16, 8192  ;;  %s2987_s14 = smov [#allocation10]  }
  0x3f   : > { %p2458_p13 = scmp.ne.s32.totalorder %s3139_s16, %s2457_s12  ;;  %s2462_s15 = sshll.u32 %s2987_s14, 4  ;;  %s2463_s15 = int_to_ptr.vmem [resolvable:$false] %s2462_s15 }
  0x40   : > { %s2464_s10 = scalar_lea.vmem %s2463_s15, 16384  ;;  %p2465_p7 = scmp.lt.s32.totalorder %s3139_s16, %s2463_s15 }
  0x41   : > { %p2460_p1 = pnand %p2458_p13, %p3149_p0  ;;  %p2466_p8 = scmp.lt.s32.totalorder %s2464_s10, %s2457_s12 }
  0x43   : > { %p2461_p11 = pneg %p2460_p1  ;;  %p2467_p3 = por %p2466_p8, %p2465_p7 }
  0x45   : > { %p2468_p4 = pnand %p2467_p3, %p2461_p11 }
  0x47   : > { %2471 = shalt.err (!%p2468_p4)
}
  0x48   : > { %s3903_s30 = smov 256   ;;  %s3904_s17 = smov 16  }
  0x49   : > { %2179 = dma.hbm_to_vmem [thread:$0]  (!%p3127_p12), %s3137_s28, 8192, %s3139_s16, %s3143_s25, %s3903_s30, %s3903_s30, %s3904_s17  }
  0x4a   : > { %p1944_p7 = scmp.ge.s32.totalorder %s2984_s23, 1  ;;  %p455_p8 = scmp.lt.s32.totalorder %s2984_s23, 4 }
  0x4b   : > { %s3183_s27 = sadd.s32 4294967295, %s2984_s23   ;;  %s3186_s14 = sadd.s32 4294967294, %s2984_s23  }
  0x4c   : > { %p3178_p11 = pnand %p1944_p7, %p455_p8  ;;  %3957 = sst [smem:[#allocation53_spill]] %s3186_s14 }
  0x4d   : > { %p3905_p2 = scmp.ne.s32.totalorder %s2976_s21, %s2972_s20  ;;  %p3912_p5 = scmp.eq.s32.totalorder %s3183_s27, 0 }
  0x4e   : > { %s3956_s12 = scalar_select %p3178_p11, 1, 0 }
  0x4f   : > { %p167_p6 = scmp.gt.s32.totalorder %s3186_s14, 0  ;;  %s1921_s16 = sadd.s32 4294967294, %s3100_s24 }
  0x50   : > { %s175_s28 = sadd.s32 1, %s2968_s19  ;;  %p3199_p9 = por %p3912_p5, %p3905_p2 }
  0x51   : > { %p170_p10 = scmp.gt.s32.totalorder %s1921_s16, 0  ;;  %p182_p13 = scmp.ne.s32.totalorder %s2968_s19, %s2964_s18 }
  0x52   : > { %s3958_s15 = scalar_select %p3199_p9, 1, 0 }
  0x53   : > { %s3204_s10 = scalar_select %p167_p6, %s3186_s14, 0 }
  0x54   : > { %s4055_s16 = smov (!%p170_p10, %s1921_s16), 0  ;;  %p188_p1 = scmp.ne.s32.totalorder %s2964_s18, %s2960_s0 }
  0x55   : > { %s172_s30 = ssub.s32 %s3204_s10, %s4055_s16  ;;  %p248_p3 = scmp.eq.s32.totalorder %s3183_s27, 2 }
  0x56   : > { %p173_p4 = scmp.eq.s32.totalorder %s172_s30, 0  ;;  %p3959_p7 = scmp.eq.s32.totalorder %s2984_s23, 0 }
  0x57   : > { %p3220_p6 = por %p188_p1, %p3912_p5  ;;  %p3963_p10 = scmp.ne.s32.totalorder %s2980_s22, %s2976_s21 }
  0x58   : > { %p3214_p8 = por %p182_p13, %p3959_p7  ;;  %p254_p9 = scmp.eq.s32.totalorder %s3186_s14, 2 }
  0x59   : > { %s3961_s4 = scalar_select %p3220_p6, 1, 0 }
  0x5a   : > { %p3227_p2 = por %p248_p3, %p3963_p10  ;;  %p3235_p7 = por %p248_p3, %p182_p13 }
  0x5b   : > { %3962 = sst [smem:[#allocation54_spill]] %s3961_s4  ;;  %s3922_s24 = sand.u32 1, %s2968_s19  }
  0x5c   : > { %s3964_s0 = scalar_select %p3227_p2, 1, 0 }
  0x5d   : > { %s3232_s16 = scalar_select %p173_p4, %s2968_s19, %s175_s28  }
  0x5e   : > { %3965 = sst [smem:[#allocation55_spill]] %s3964_s0  ;;  %p3969_p11 = scmp.ne.s32.totalorder %s2976_s21, %s2972_s20 }
  0x5f   : > { %3966 = sst [smem:[#allocation56_spill]] %s3232_s16  ;;  %p3247_p5 = por %p254_p9, %p188_p1 }
  0x60   : > { %s3967_s30 = scalar_select %p3235_p7, 1, 0 }
  0x61   : > { %p3243_p12 = por %p254_p9, %p3969_p11  ;;  %s1936_s9 = sshll.u32 %s3922_s24, 8 }
  0x62   : > { %3968 = sst [smem:[#allocation57_spill]] %s3967_s30  ;;  %s2128_s0 = sshll.u32 %s3204_s10, 8 }
  0x63   : > { %s3970_s8 = scalar_select %p3243_p12, 1, 0 }
  0x64   : > { %s3972_s22 = scalar_select %p3247_p5, 1, 0 }
  0x65   : > { %3971 = sst [smem:[#allocation58_spill]] %s3970_s8  ;;  %s3974_s6 = sld [smem:[#allocation65_spill]] }
  0x66   : > { %3973 = sst [smem:[#allocation59_spill]] %s3972_s22  ;;  %s415_s20 = scalar_lea.vmem [#allocation13], %s1936_s9 }
  0x67   : > { %s425_s30 = sshll.u32 %s415_s20, 4  ;;  %p3975_p11 = scmp.lt.s32.totalorder %s2984_s23, 3  ;;  %s3267_s30 = int_to_ptr.vmem [resolvable:$true] %s425_s30 }
  0x68   : > { %s1928_s24 = sshll.u32 %s3120_s29, 3  ;;  %s3977_s16 = sand.u32 1, %s2984_s23  }
  0x69   : > { %p3263_p9 = pnand %p3975_p11, %p3214_p8 }
  0x6b   : > { %s3257_s14 = scalar_lea.hbm %s3974_s6, %s2128_s0  ;;  %s3272_s0 = scalar_lea.sflag [#allocation14], %s3977_s16 }
  0x6c   : > { %s3976_s8 = scalar_select %p3263_p9, 1, 0 }
  0x6d   : > { %s2472_s28 = scalar_lea.hbm %s3257_s14, 4096  ;;  %p3931_p1 = pneg %p3263_p9 }
  0x6e   : > { %p2473_p13 = scmp.ne.s32.totalorder %s3257_s14, %s2472_s28  ;;  %s2477_s17 = scalar_lea.hbm %s3974_s6, 4096 }
  0x6f   : > { %p2478_p8 = scmp.lt.u32.totalorder %s3257_s14, %s3974_s6  ;;  %p2479_p10 = scmp.lt.u32.totalorder %s2477_s17, %s2472_s28 }
  0x70   : > { %p2475_p3 = pnand %p3931_p1, %p2473_p13  ;;  %p2481_p5 = scmp.lt.u32.totalorder %s2472_s28, %s3257_s14 }
  0x71   : > { %p2480_p11 = por %p2479_p10, %p2478_p8 }
  0x72   : > { %p2476_p4 = pneg %p2475_p3 }
  0x73   : > { %p2482_p12 = por %p2481_p5, %p2480_p11 }
  0x75   : > { %p2483_p7 = pnand %p2482_p12, %p2476_p4 }
  0x77   : > { %2486 = shalt.err (!%p2483_p7)
}
  0x78   : > { %s2487_s16 = scalar_lea.vmem %s3267_s30, 4096  ;;  %s2990_s9 = smov [#allocation13]  }
  0x79   : > { %p2488_p13 = scmp.ne.s32.totalorder %s3267_s30, %s2487_s16  ;;  %s2492_s20 = sshll.u32 %s2990_s9, 4  ;;  %s2493_s20 = int_to_ptr.vmem [resolvable:$false] %s2492_s20 }
  0x7a   : > { %s2494_s1 = scalar_lea.vmem %s2493_s20, 8192  ;;  %p2495_p6 = scmp.lt.s32.totalorder %s3267_s30, %s2493_s20 }
  0x7b   : > { %p2490_p3 = pnand %p2488_p13, %p3931_p1  ;;  %p2496_p8 = scmp.lt.s32.totalorder %s2494_s1, %s2487_s16 }
  0x7d   : > { %p2491_p2 = pneg %p2490_p3  ;;  %p2497_p10 = por %p2496_p8, %p2495_p6 }
  0x7f   : > { %p2498_p5 = pnand %p2497_p10, %p2491_p2 }
  0x81   : > { %2501 = shalt.err (!%p2498_p5)
}
  0x82   : > { %s3978_s22 = smov 16   ;;  %s3979_s28 = smov 256  }
  0x83   : > { %2185 = dma.hbm_to_vmem [thread:$0]  (!%p3263_p9), %s3257_s14, 4096, %s3267_s30, %s3272_s0, %s3979_s28, %s3979_s28, %s3978_s22  }
  0x84   : > { %s1929_s17 = sshll.u32 %s3106_s26, 7  ;;  %s3980_s3 = sld [smem:[#allocation62_spill]] }
  0x85   : > { %s351_s1 = scalar_lea.vmem [#allocation7], %s1928_s24  ;;  %s1933_s23 = sshll.u32 %s3120_s29, 2 }
  0x86   : > { %s360_s6 = sshll.u32 %s351_s1, 4  ;;  %s348_s2 = scalar_lea.sflag [#allocation8], %s3120_s29  ;;  %s3311_s6 = int_to_ptr.vmem [resolvable:$true] %s360_s6 }
  0x8a   : > { %s3307_s20 = scalar_lea.hbm %s3980_s3, %s1929_s17  ;;  %s2507_s22 = scalar_lea.hbm %s3980_s3, 256 }
  0x8b   : > { %s2502_s4 = scalar_lea.hbm %s3307_s20, 128  ;;  %p2508_p7 = scmp.lt.u32.totalorder %s3307_s20, %s3980_s3 }
  0x8c   : > { %p2503_p12 = scmp.ne.s32.totalorder %s3307_s20, %s2502_s4  ;;  %p2509_p4 = scmp.lt.u32.totalorder %s2507_s22, %s2502_s4 }
  0x8d   : > { %p2511_p13 = scmp.lt.u32.totalorder %s2502_s4, %s3307_s20 }
  0x8e   : > { %p2505_p2 = pnand %p2503_p12, %p3149_p0  ;;  %p2510_p11 = por %p2509_p4, %p2508_p7 }
  0x90   : > { %p2506_p6 = pneg %p2505_p2  ;;  %p2512_p3 = por %p2511_p13, %p2510_p11 }
  0x92   : > { %p2513_p8 = pnand %p2512_p3, %p2506_p6 }
  0x94   : > { %2516 = shalt.err (!%p2513_p8)
}
  0x95   : > { %s2517_s24 = scalar_lea.vmem %s3311_s6, 128  ;;  %s2991_s9 = smov [#allocation7]  }
  0x96   : > { %p2518_p10 = scmp.ne.s32.totalorder %s3311_s6, %s2517_s24  ;;  %s2522_s16 = sshll.u32 %s2991_s9, 4  ;;  %s2523_s16 = int_to_ptr.vmem [resolvable:$false] %s2522_s16 }
  0x97   : > { %s2524_s1 = scalar_lea.vmem %s2523_s16, 256  ;;  %p2525_p2 = scmp.lt.s32.totalorder %s3311_s6, %s2523_s16 }
  0x98   : > { %p2520_p5 = pnand %p2518_p10, %p3149_p0  ;;  %p2526_p1 = scmp.lt.s32.totalorder %s2524_s1, %s2517_s24 }
  0x9a   : > { %p2521_p12 = pneg %p2520_p5  ;;  %p2527_p7 = por %p2526_p1, %p2525_p2 }
  0x9c   : > { %p2528_p4 = pnand %p2527_p7, %p2521_p12 }
  0x9e   : > { %2531 = shalt.err (!%p2528_p4)
}
  0x9f   : > { %p3981_p6 = scmp.ne.s32.totalorder %s3953_s11, 0  ;;  %s2127_s4 = sshll.u32 %s3106_s26, 6 }
  0xa0   : > { %s3982_s5 = sld [smem:[#allocation64_spill]]  ;;  %s394_s28 = scalar_lea.vmem [#allocation12], %s1933_s23 }
  0xa1   : > { %2176 = dma.hbm_to_vmem [thread:$0]  (!%p3981_p6), %s3307_s20, 128, %s3311_s6, %s348_s2  }
  0xa2   : > { %s404_s17 = sshll.u32 %s394_s28, 4  ;;  %s3983_s24 = sand.u32 1, %s2968_s19   ;;  %s405_s17 = int_to_ptr.vmem [resolvable:$true] %s404_s17 }
  0xa3   : > { %s3346_s9 = sshll.u32 %s3983_s24, 2 }
  0xa6   : > { %s3340_s22 = scalar_lea.hbm %s3982_s5, %s2127_s4  ;;  %s2537_s26 = scalar_lea.hbm %s3982_s5, 128 }
  0xa7   : > { %s2532_s16 = scalar_lea.hbm %s3340_s22, 64  ;;  %p2538_p3 = scmp.lt.u32.totalorder %s3340_s22, %s3982_s5 }
  0xa8   : > { %p2533_p1 = scmp.ne.s32.totalorder %s3340_s22, %s2532_s16  ;;  %p2539_p8 = scmp.lt.u32.totalorder %s2537_s26, %s2532_s16 }
  0xa9   : > { %p2541_p5 = scmp.lt.u32.totalorder %s2532_s16, %s3340_s22 }
  0xaa   : > { %p2535_p11 = pnand %p2533_p1, %p3149_p0  ;;  %p2540_p10 = por %p2539_p8, %p2538_p3 }
  0xac   : > { %p2536_p13 = pneg %p2535_p11  ;;  %p2542_p12 = por %p2541_p5, %p2540_p10 }
  0xae   : > { %p2543_p2 = pnand %p2542_p12, %p2536_p13 }
  0xb0   : > { %2546 = shalt.err (!%p2543_p2)
}
  0xb1   : > { %s2547_s23 = scalar_lea.vmem %s405_s17, 64  ;;  %s2992_s1 = smov [#allocation12]  }
  0xb2   : > { %p2548_p7 = scmp.ne.s32.totalorder %s405_s17, %s2547_s23  ;;  %s2552_s4 = sshll.u32 %s2992_s1, 4  ;;  %s2553_s4 = int_to_ptr.vmem [resolvable:$false] %s2552_s4 }
  0xb3   : > { %s2554_s14 = scalar_lea.vmem %s2553_s4, 128  ;;  %p2555_p11 = scmp.lt.s32.totalorder %s405_s17, %s2553_s4 }
  0xb4   : > { %p2550_p4 = pnand %p2548_p7, %p3149_p0  ;;  %p2556_p9 = scmp.lt.s32.totalorder %s2554_s14, %s2547_s23 }
  0xb6   : > { %p2551_p1 = pneg %p2550_p4  ;;  %p2557_p6 = por %p2556_p9, %p2555_p11 }
  0xb8   : > { %p2558_p3 = pnand %p2557_p6, %p2551_p1 }
  0xba   : > { %2561 = shalt.err (!%p2558_p3)
}
  0xbb   : > { %p3984_p8 = scmp.ne.s32.totalorder %s3953_s11, 0  ;;  %s2129_s13 = sshll.u32 %s3204_s10, 6 }
  0xbc   : > { %s3985_s7 = sld [smem:[#allocation66_spill]]  ;;  %s439_s16 = scalar_lea.vmem [#allocation15], %s3346_s9 }
  0xbd   : > { %2182 = dma.hbm_to_vmem [thread:$0]  (!%p3984_p8), %s3340_s22, 64, %s405_s17, %s3143_s25  }
  0xbe   : > { %s450_s2 = sshll.u32 %s439_s16, 4  ;;  %p3986_p9 = scmp.ne.s32.totalorder %s3976_s8, 0  ;;  %s451_s2 = int_to_ptr.vmem [resolvable:$true] %s450_s2 }
  0xc0   : > { %p3987_p6 = pneg %p3986_p9 }
  0xc2   : > { %s3370_s24 = scalar_lea.hbm %s3985_s7, %s2129_s13  ;;  %s2567_s22 = scalar_lea.hbm %s3985_s7, 64 }
  0xc3   : > { %s2562_s11 = scalar_lea.hbm %s3370_s24, 64  ;;  %p2568_p5 = scmp.lt.u32.totalorder %s3370_s24, %s3985_s7 }
  0xc4   : > { %p2563_p0 = scmp.ne.s32.totalorder %s3370_s24, %s2562_s11  ;;  %p2569_p12 = scmp.lt.u32.totalorder %s2567_s22, %s2562_s11 }
  0xc5   : > { %p2571_p7 = scmp.lt.u32.totalorder %s2562_s11, %s3370_s24 }
  0xc6   : > { %p2565_p13 = pnand %p2563_p0, %p3987_p6  ;;  %p2570_p2 = por %p2569_p12, %p2568_p5 }
  0xc8   : > { %p2566_p10 = pneg %p2565_p13  ;;  %p2572_p4 = por %p2571_p7, %p2570_p2 }
  0xca   : > { %p2573_p1 = pnand %p2572_p4, %p2566_p10 }
  0xcc   : > { %2576 = shalt.err (!%p2573_p1)
}
  0xcd   : > { %s2577_s9 = scalar_lea.vmem %s451_s2, 64  ;;  %p3988_p3 = pmov %p3987_p6 }
  0xce   : > { %p2578_p11 = scmp.ne.s32.totalorder %s451_s2, %s2577_s9  ;;  %s2993_s26 = smov [#allocation15]  }
  0xcf   : > { %s2582_s29 = sshll.u32 %s2993_s26, 4  ;;  %s2583_s29 = int_to_ptr.vmem [resolvable:$false] %s2582_s29 }
  0xd0   : > { %p2580_p8 = pnand %p2578_p11, %p3988_p3  ;;  %s2584_s20 = scalar_lea.vmem %s2583_s29, 128 }
  0xd1   : > { %p2585_p6 = scmp.lt.s32.totalorder %s451_s2, %s2583_s29  ;;  %p2586_p13 = scmp.lt.s32.totalorder %s2584_s20, %s2577_s9 }
  0xd2   : > { %p2581_p0 = pneg %p2580_p8 }
  0xd3   : > { %p2587_p5 = por %p2586_p13, %p2585_p6 }
  0xd5   : > { %p2588_p12 = pnand %p2587_p5, %p2581_p0 }
  0xd7   : > { %2591 = shalt.err (!%p2588_p12)
}
  0xd8   : > { %2188 = dma.hbm_to_vmem [thread:$0]  (!%p3986_p9), %s3370_s24, 64, %s451_s2, %s3272_s0  }
  0xd9   : > { %p3989_p10 = scmp.ne.s32.totalorder %s3956_s12, 0 }
  0xda   : > { %s3396_s23 = sand.u32 (!%p3989_p10), 1, %s2976_s21   ;;  %p3990_p2 = scmp.ne.s32.totalorder (!%p3989_p10), %s3958_s15, 0 }
  0xdb   : > { %459 = sbr.rel (%p3989_p10) target bundleno = 1126 (0x466), region = 44  ;;  %s3399_s1 = sshll.u32 (!%p3989_p10), %s3396_s23, 3 }
  0xdc   : > { %s462_s4 = scalar_lea.sflag (!%p3989_p10), [#allocation8], %s3396_s23 }
  0xe2   : > { %2931 = dma.done.wait (%p3990_p2), %s462_s4, 128  }
  0xe3   : > { %2933 = vsyncadd (%p3990_p2), %s462_s4, 4294967168  ;;  %s3408_s8 = sand.u32 1, %s3183_s27   ;;  %s1946_s12 = sshll.u32 %s3396_s23, 9 }
  0xe4   : > { %s471_s0 = scalar_lea.sflag [#allocation11], %s3408_s8  ;;  %s3412_s13 = scalar_lea.vmem [#allocation10], %s1946_s12 }
  0xe5   : > { %2935 = dma.done.wait (%p3990_p2), %s471_s0, 8256  }
  0xe6   : > { %2937 = vsyncadd (%p3990_p2), %s471_s0, 4294959040  ;;  %s3991_s30 = sld [smem:[#allocation54_spill]]  ;;  %s1947_s28 = sshll.u32 %s3396_s23, 2 }
  0xe7   : > { %s490_s24 = sand.u32 1, %s2964_s18   ;;  %s3420_s2 = scalar_lea.vmem [#allocation12], %s1947_s28 }
  0xe8   : > { %s1948_s16 = sshll.u32 %s490_s24, 8  ;;  %s489_s11 = scalar_lea.sflag [#allocation14], %s3408_s8 }
  0xe9   : > { %s3423_s25 = scalar_lea.vmem [#allocation13], %s1948_s16 }
  0xec   : > { %p3992_p9 = scmp.ne.s32.totalorder %s3991_s30, 0 }
  0xee   : > { %2939 = dma.done.wait (%p3992_p9), %s489_s11, 4160  }
  0xef   : > { %2941 = vsyncadd (%p3992_p9), %s489_s11, 4294963136  ;;  %s1949_s15 = sshll.u32 %s490_s24, 2  ;;  %s1952_s10 = sshll.u32 %s490_s24, 5 }
  0xf0   : > { %p570_p7 = scmp.lt.s32.totalorder %s3183_s27, 1  ;;  %s3993_s29 = sld [smem:[#allocation61_spill]] }
  0xf1   : > { %s3439_s4 = scalar_lea.vmem [#allocation15], %s1949_s15  ;;  %s3443_s30 = scalar_lea.vmem [#allocation19], %s1952_s10 }
  0xf2   : > { %s3431_s22 = scalar_select %p570_p7, %s3183_s27, 1 }
  0xf3   : > { %p1957_p4 = scmp.ge.s32.totalorder %s3183_s27, 2 }
  0xf4   : > { %s573_s17 = scalar_select %p570_p7, %s3431_s22, 1 }
  0xf5   : > { %604 = sbr.rel (%p1957_p4) target bundleno = 796 (0x31c), region = 68  ;;  %s609_s28 = sld [smem:[#allocation6]] (!%p1957_p4) }
  0xf6   : > { %s1956_s6 = sshll.u32 %s573_s17, 3  ;;  %s1965_s24 = sld [smem:[#allocation6 + $0x1]] (!%p1957_p4) }
  0xf7   : > { %s3437_s20 = scalar_lea.vmem %s3993_s29, %s1956_s6  ;;  %s2994_s16 = smov (!%p1957_p4), [#allocation2]  }
  0xf8   : > { %s623_s11 = sshll.u32 (!%p1957_p4), %s2994_s16, 4  ;;  %s2995_s17 = smov (!%p1957_p4), [#allocation2 + $0x1]   ;;  %s3446_s11 = int_to_ptr.vmem [resolvable:$true] %s623_s11 }
  0xf9   : > { %s642_s14 = sshll.u32 (!%p1957_p4), %s2995_s17, 4  ;;  %s3450_s6 = sld [smem:[#allocation6 + $0x2]] (!%p1957_p4)  ;;  %s3448_s14 = int_to_ptr.vmem [resolvable:$true] %s642_s14 }
  0xfa   : > { %s3452_s15 = sld [smem:[#allocation6 + $0x3]] (!%p1957_p4)  ;;  %s3994_s29 = sld [smem:[#allocation60_spill]] (!%p1957_p4) }
  0xfb   : > { %p610_p1 = scmp.gt.s32.totalorder (!%p1957_p4), %s609_s28, 0  ;;  %p1959_p11 = scmp.lt.s32.totalorder (!%p1957_p4), %s609_s28, 511 }
  0xfc   : > { %p628_p3 = scmp.gt.s32.totalorder %s1965_s24, 0  ;;  %p1966_p8 = scmp.lt.s32.totalorder %s1965_s24, 511 }
  0xfd   : > { %s4057_s28 = smov (!%p610_p1, %s609_s28), 0  ;;  %p3995_p13 = scmp.eq.s32.totalorder %s3183_s27, 0 }
  0xfe   : > { %s4059_s24 = smov (!%p628_p3, %s1965_s24), 0  ;;  %s4061_s28 = smov (!%p1959_p11, %s4057_s28), 511 }
  0xff   : > { %s4063_s24 = smov (!%p1966_p8, %s4059_s24), 511  ;;  %s1964_s10 = sshll.u32 %s4061_s28, 4 }
 0x100   : > { %s615_s16 = scalar_lea.hbm %s3994_s29, %s1964_s10  ;;  %s1971_s17 = sshll.u32 %s4063_s24, 4 }
 0x101   : > { %s2592_s12 = scalar_lea.hbm %s615_s16, 16  ;;  %s3466_s5 = scalar_lea.hbm %s3994_s29, 8192 }
 0x102   : > { %p2593_p6 = scmp.ne.s32.totalorder %s615_s16, %s2592_s12  ;;  %p2597_p10 = scmp.lt.u32.totalorder %s615_s16, %s3994_s29 }
 0x103   : > { %p2598_p2 = scmp.lt.u32.totalorder %s3466_s5, %s2592_s12  ;;  %p2600_p7 = scmp.lt.u32.totalorder %s2592_s12, %s615_s16 }
 0x104   : > { %p2594_p5 = pnand %p2593_p6, %p3995_p13 }
 0x105   : > { %p2599_p9 = por %p2598_p2, %p2597_p10 }
 0x106   : > { %p2595_p12 = pneg %p2594_p5 }
 0x107   : > { %p2601_p4 = por %p2600_p7, %p2599_p9 }
 0x109   : > { %p2602_p1 = pnand %p2601_p4, %p2595_p12 }
 0x10b   : > { %2605 = shalt.err (!%p2602_p1)  }
 0x10c   : > { %s2606_s28 = scalar_lea.vmem %s3446_s11, 16  ;;  %p3996_p3 = pmov %p3995_p13 }
 0x10d   : > { %p2607_p11 = scmp.ne.s32.totalorder %s3446_s11, %s2606_s28  ;;  %s3477_s3 = scalar_lea.vmem %s3446_s11, 256 }
 0x10e   : > { %p2613_p13 = scmp.lt.s32.totalorder %s3446_s11, %s3446_s11  ;;  %p2614_p5 = scmp.lt.s32.totalorder %s3477_s3, %s2606_s28 }
 0x10f   : > { %p2608_p8 = pnand %p2607_p11, %p3996_p3 }
 0x110   : > { %p2615_p10 = por %p2614_p5, %p2613_p13 }
 0x111   : > { %p2609_p6 = pneg %p2608_p8 }
 0x113   : > { %p2616_p2 = pnand %p2615_p10, %p2609_p6 }
 0x115   : > { %2619 = shalt.err (!%p2616_p2)  }
 0x116   : > { %p3997_p12 = pmov %p3996_p3  ;;  %s633_s12 = scalar_lea.hbm %s3994_s29, %s1971_s17 }
 0x117   : > { %s2620_s0 = scalar_lea.hbm %s633_s12, 16  ;;  %p3998_p4 = pmov %p3996_p3 }
 0x118   : > { %2158 = dma.hbm_to_vmem [thread:$0]  (%p3997_p12), %s615_s16, 16, %s3446_s11, [#allocation4] }
 0x119   : > { %p2621_p7 = scmp.ne.s32.totalorder %s633_s12, %s2620_s0  ;;  %p2625_p3 = scmp.lt.u32.totalorder %s633_s12, %s3994_s29 }
 0x11a   : > { %p2626_p8 = scmp.lt.u32.totalorder %s3466_s5, %s2620_s0  ;;  %p2628_p13 = scmp.lt.u32.totalorder %s2620_s0, %s633_s12 }
 0x11b   : > { %p2622_p1 = pnand %p2621_p7, %p3998_p4 }
 0x11c   : > { %p2627_p6 = por %p2626_p8, %p2625_p3 }
 0x11d   : > { %p2623_p11 = pneg %p2622_p1 }
 0x11e   : > { %p2629_p5 = por %p2628_p13, %p2627_p6 }
 0x120   : > { %p2630_p10 = pnand %p2629_p5, %p2623_p11 }
 0x122   : > { %2633 = shalt.err (!%p2630_p10)  }
 0x123   : > { %s2634_s9 = scalar_lea.vmem %s3448_s14, 16  ;;  %p3999_p12 = pmov %p3998_p4 }
 0x124   : > { %p2635_p2 = scmp.ne.s32.totalorder %s3448_s14, %s2634_s9  ;;  %p2641_p1 = scmp.lt.s32.totalorder %s3448_s14, %s3446_s11 }
 0x125   : > { %p2642_p9 = scmp.lt.s32.totalorder %s3477_s3, %s2634_s9 }
 0x126   : > { %p2636_p7 = pnand %p2635_p2, %p3999_p12 }
 0x127   : > { %p2643_p0 = por %p2642_p9, %p2641_p1 }
 0x128   : > { %p2637_p4 = pneg %p2636_p7 }
 0x12a   : > { %p2644_p3 = pnand %p2643_p0, %p2637_p4 }
 0x12c   : > { %2647 = shalt.err (!%p2644_p3)  }
 0x12d   : > { %p4000_p8 = pmov %p3999_p12  ;;  %p4001_p11 = scmp.gt.s32.totalorder %s3450_s6, 0 }
 0x12e   : > { %s2996_s16 = smov [#allocation2 + $0x2]   ;;  %p4002_p13 = scmp.lt.s32.totalorder %s3450_s6, 511 }
 0x12f   : > { %2159 = dma.hbm_to_vmem [thread:$0]  (%p4000_p8), %s633_s12, 16, %s3448_s14, [#allocation4] }
 0x130   : > { %s648_s26 = scalar_select %p4001_p11, %s3450_s6, 0 }
 0x131   : > { %s661_s17 = sshll.u32 %s2996_s16, 4  ;;  %s2997_s24 = smov [#allocation2 + $0x3]   ;;  %s662_s17 = int_to_ptr.vmem [resolvable:$true] %s661_s17 }
 0x132   : > { %s4065_s26 = smov (!%p4002_p13, %s648_s26), 511  ;;  %s680_s10 = sshll.u32 %s2997_s24, 4  ;;  %s3530_s10 = int_to_ptr.vmem [resolvable:$true] %s680_s10 }
 0x133   : > { %s1978_s28 = sshll.u32 %s4065_s26, 4  ;;  %p4003_p5 = pmov %p4000_p8 }
 0x134   : > { %s652_s0 = scalar_lea.hbm %s3994_s29, %s1978_s28 }
 0x135   : > { %s2648_s9 = scalar_lea.hbm %s652_s0, 16  ;;  %p2653_p12 = scmp.lt.u32.totalorder %s652_s0, %s3994_s29 }
 0x136   : > { %p2649_p9 = scmp.ne.s32.totalorder %s652_s0, %s2648_s9  ;;  %p2654_p7 = scmp.lt.u32.totalorder %s3466_s5, %s2648_s9 }
 0x137   : > { %p2656_p1 = scmp.lt.u32.totalorder %s2648_s9, %s652_s0 }
 0x138   : > { %p2650_p10 = pnand %p2649_p9, %p4003_p5  ;;  %p2655_p4 = por %p2654_p7, %p2653_p12 }
 0x13a   : > { %p2651_p2 = pneg %p2650_p10  ;;  %p2657_p3 = por %p2656_p1, %p2655_p4 }
 0x13c   : > { %p2658_p8 = pnand %p2657_p3, %p2651_p2 }
 0x13e   : > { %2661 = shalt.err (!%p2658_p8)  }
 0x13f   : > { %s2662_s6 = scalar_lea.vmem %s662_s17, 16  ;;  %p4004_p13 = pmov %p4003_p5 }
 0x140   : > { %p2663_p11 = scmp.ne.s32.totalorder %s662_s17, %s2662_s6  ;;  %p2669_p9 = scmp.lt.s32.totalorder %s662_s17, %s3446_s11 }
 0x141   : > { %p2670_p5 = scmp.lt.s32.totalorder %s3477_s3, %s2662_s6 }
 0x142   : > { %p2664_p0 = pnand %p2663_p11, %p4004_p13 }
 0x143   : > { %p2671_p10 = por %p2670_p5, %p2669_p9 }
 0x144   : > { %p2665_p6 = pneg %p2664_p0 }
 0x146   : > { %p2672_p7 = pnand %p2671_p10, %p2665_p6 }
 0x148   : > { %2675 = shalt.err (!%p2672_p7)  }
 0x149   : > { %p4005_p12 = pmov %p4004_p13  ;;  %p4006_p2 = scmp.gt.s32.totalorder %s3452_s15, 0 }
 0x14a   : > { %s3532_s16 = sld [smem:[#allocation6 + $0x4]]  ;;  %p4007_p0 = scmp.lt.s32.totalorder %s3452_s15, 511 }
 0x14b   : > { %2160 = dma.hbm_to_vmem [thread:$0]  (%p4005_p12), %s652_s0, 16, %s662_s17, [#allocation4] }
 0x14c   : > { %s667_s26 = scalar_select %p4006_p2, %s3452_s15, 0 }
 0x14d   : > { %s3536_s28 = sld [smem:[#allocation6 + $0x5]]  ;;  %s2998_s21 = smov [#allocation2 + $0x4]  }
 0x14e   : > { %s4067_s26 = smov (!%p4007_p0, %s667_s26), 511  ;;  %s699_s24 = sshll.u32 %s2998_s21, 4  ;;  %s3541_s24 = int_to_ptr.vmem [resolvable:$true] %s699_s24 }
 0x14f   : > { %s1985_s7 = sshll.u32 %s4067_s26, 4  ;;  %p4008_p4 = pmov %p4005_p12 }
 0x150   : > { %s671_s12 = scalar_lea.hbm %s3994_s29, %s1985_s7 }
 0x151   : > { %s2676_s17 = scalar_lea.hbm %s671_s12, 16  ;;  %p2681_p8 = scmp.lt.u32.totalorder %s671_s12, %s3994_s29 }
 0x152   : > { %p2677_p6 = scmp.ne.s32.totalorder %s671_s12, %s2676_s17  ;;  %p2682_p11 = scmp.lt.u32.totalorder %s3466_s5, %s2676_s17 }
 0x153   : > { %p2684_p9 = scmp.lt.u32.totalorder %s2676_s17, %s671_s12 }
 0x154   : > { %p2678_p1 = pnand %p2677_p6, %p4008_p4  ;;  %p2683_p13 = por %p2682_p11, %p2681_p8 }
 0x156   : > { %p2679_p3 = pneg %p2678_p1  ;;  %p2685_p5 = por %p2684_p9, %p2683_p13 }
 0x158   : > { %p2686_p10 = pnand %p2685_p5, %p2679_p3 }
 0x15a   : > { %2689 = shalt.err (!%p2686_p10)  }
 0x15b   : > { %s2690_s15 = scalar_lea.vmem %s3530_s10, 16  ;;  %p4009_p12 = pmov %p4008_p4 }
 0x15c   : > { %p2691_p7 = scmp.ne.s32.totalorder %s3530_s10, %s2690_s15  ;;  %p2697_p6 = scmp.lt.s32.totalorder %s3530_s10, %s3446_s11 }
 0x15d   : > { %p2698_p4 = scmp.lt.s32.totalorder %s3477_s3, %s2690_s15 }
 0x15e   : > { %p2692_p2 = pnand %p2691_p7, %p4009_p12 }
 0x15f   : > { %p2699_p1 = por %p2698_p4, %p2697_p6 }
 0x160   : > { %p2693_p0 = pneg %p2692_p2 }
 0x162   : > { %p2700_p8 = pnand %p2699_p1, %p2693_p0 }
 0x164   : > { %2703 = shalt.err (!%p2700_p8)  }
 0x165   : > { %p4010_p11 = pmov %p4009_p12  ;;  %p685_p3 = scmp.gt.s32.totalorder %s3532_s16, 0 }
 0x166   : > { %p1987_p13 = scmp.lt.s32.totalorder %s3532_s16, 511  ;;  %s3561_s26 = sld [smem:[#allocation6 + $0x6]] }
 0x167   : > { %2161 = dma.hbm_to_vmem [thread:$0]  (%p4010_p11), %s671_s12, 16, %s3530_s10, [#allocation4] }
 0x168   : > { %s4069_s16 = smov (!%p685_p3, %s3532_s16), 0  ;;  %p704_p9 = scmp.gt.s32.totalorder %s3536_s28, 0 }
 0x169   : > { %s4071_s16 = smov (!%p1987_p13, %s4069_s16), 511  ;;  %s2999_s9 = smov [#allocation2 + $0x5]  }
 0x16a   : > { %s705_s7 = scalar_select %p704_p9, %s3536_s28, 0 }
 0x16b   : > { %s1992_s21 = sshll.u32 %s4071_s16, 4  ;;  %s718_s14 = sshll.u32 %s2999_s9, 4  ;;  %s3570_s14 = int_to_ptr.vmem [resolvable:$true] %s718_s14 }
 0x16c   : > { %s690_s6 = scalar_lea.hbm %s3994_s29, %s1992_s21  ;;  %p4011_p7 = pmov %p4010_p11 }
 0x16d   : > { %s2704_s10 = scalar_lea.hbm %s690_s6, 16  ;;  %p2709_p0 = scmp.lt.u32.totalorder %s690_s6, %s3994_s29 }
 0x16e   : > { %p2705_p10 = scmp.ne.s32.totalorder %s690_s6, %s2704_s10  ;;  %p2710_p6 = scmp.lt.u32.totalorder %s3466_s5, %s2704_s10 }
 0x16f   : > { %p2712_p1 = scmp.lt.u32.totalorder %s2704_s10, %s690_s6 }
 0x170   : > { %p2706_p12 = pnand %p2705_p10, %p4011_p7  ;;  %p2711_p4 = por %p2710_p6, %p2709_p0 }
 0x172   : > { %p2707_p2 = pneg %p2706_p12  ;;  %p2713_p8 = por %p2712_p1, %p2711_p4 }
 0x174   : > { %p2714_p11 = pnand %p2713_p8, %p2707_p2 }
 0x176   : > { %2717 = shalt.err (!%p2714_p11)  }
 0x177   : > { %s2718_s16 = scalar_lea.vmem %s3541_s24, 16  ;;  %p4012_p13 = pmov %p4011_p7 }
 0x178   : > { %p2719_p3 = scmp.ne.s32.totalorder %s3541_s24, %s2718_s16  ;;  %p2725_p7 = scmp.lt.s32.totalorder %s3541_s24, %s3446_s11 }
 0x179   : > { %p2726_p12 = scmp.lt.s32.totalorder %s3477_s3, %s2718_s16 }
 0x17a   : > { %p2720_p9 = pnand %p2719_p3, %p4012_p13 }
 0x17b   : > { %p2727_p5 = por %p2726_p12, %p2725_p7 }
 0x17c   : > { %p2721_p10 = pneg %p2720_p9 }
 0x17e   : > { %p2728_p0 = pnand %p2727_p5, %p2721_p10 }
 0x180   : > { %2731 = shalt.err (!%p2728_p0)  }
 0x181   : > { %p4013_p6 = pmov %p4012_p13  ;;  %p4014_p2 = scmp.lt.s32.totalorder %s3536_s28, 511 }
 0x182   : > { %s3000_s10 = smov [#allocation2 + $0x6]  }
 0x183   : > { %2162 = dma.hbm_to_vmem [thread:$0]  (%p4013_p6), %s690_s6, 16, %s3541_s24, [#allocation4] }
 0x184   : > { %s4073_s7 = smov (!%p4014_p2, %s705_s7), 511  ;;  %s737_s12 = sshll.u32 %s3000_s10, 4  ;;  %s738_s12 = int_to_ptr.vmem [resolvable:$true] %s737_s12 }
 0x185   : > { %s1999_s21 = sshll.u32 %s4073_s7, 4  ;;  %p4015_p8 = pmov %p4013_p6 }
 0x186   : > { %s709_s0 = scalar_lea.hbm %s3994_s29, %s1999_s21 }
 0x187   : > { %s2732_s15 = scalar_lea.hbm %s709_s0, 16  ;;  %p2737_p13 = scmp.lt.u32.totalorder %s709_s0, %s3994_s29 }
 0x188   : > { %p2733_p5 = scmp.ne.s32.totalorder %s709_s0, %s2732_s15  ;;  %p2738_p9 = scmp.lt.u32.totalorder %s3466_s5, %s2732_s15 }
 0x189   : > { %p2740_p7 = scmp.lt.u32.totalorder %s2732_s15, %s709_s0 }
 0x18a   : > { %p2734_p11 = pnand %p2733_p5, %p4015_p8  ;;  %p2739_p10 = por %p2738_p9, %p2737_p13 }
 0x18c   : > { %p2735_p3 = pneg %p2734_p11  ;;  %p2741_p12 = por %p2740_p7, %p2739_p10 }
 0x18e   : > { %p2742_p0 = pnand %p2741_p12, %p2735_p3 }
 0x190   : > { %2745 = shalt.err (!%p2742_p0)  }
 0x191   : > { %s2746_s28 = scalar_lea.vmem %s3570_s14, 16  ;;  %p4016_p2 = pmov %p4015_p8 }
 0x192   : > { %p2747_p6 = scmp.ne.s32.totalorder %s3570_s14, %s2746_s28  ;;  %p2753_p11 = scmp.lt.s32.totalorder %s3570_s14, %s3446_s11 }
 0x193   : > { %p2754_p1 = scmp.lt.s32.totalorder %s3477_s3, %s2746_s28 }
 0x194   : > { %p2748_p5 = pnand %p2747_p6, %p4016_p2 }
 0x195   : > { %p2755_p4 = por %p2754_p1, %p2753_p11 }
 0x196   : > { %p2749_p8 = pneg %p2748_p5 }
 0x198   : > { %p2756_p9 = pnand %p2755_p4, %p2749_p8 }
 0x19a   : > { %2759 = shalt.err (!%p2756_p9)  }
 0x19b   : > { %p4017_p13 = pmov %p4016_p2  ;;  %p4018_p3 = scmp.gt.s32.totalorder %s3561_s26, 0 }
 0x19c   : > { %s3614_s24 = sld [smem:[#allocation6 + $0x7]]  ;;  %p4019_p10 = scmp.lt.s32.totalorder %s3561_s26, 511 }
 0x19d   : > { %2163 = dma.hbm_to_vmem [thread:$0]  (%p4017_p13), %s709_s0, 16, %s3570_s14, [#allocation4] }
 0x19e   : > { %s724_s19 = scalar_select %p4018_p3, %s3561_s26, 0 }
 0x19f   : > { %p4020_p1 = pmov %p4016_p2 }
 0x1a0   : > { %s4075_s19 = smov (!%p4019_p10, %s724_s19), 511 }
 0x1a1   : > { %s2006_s7 = sshll.u32 %s4075_s19, 4 }
 0x1a2   : > { %s728_s9 = scalar_lea.hbm %s3994_s29, %s2006_s7 }
 0x1a3   : > { %s2760_s17 = scalar_lea.hbm %s728_s9, 16  ;;  %p2765_p0 = scmp.lt.u32.totalorder %s728_s9, %s3994_s29 }
 0x1a4   : > { %p2761_p4 = scmp.ne.s32.totalorder %s728_s9, %s2760_s17  ;;  %p2766_p6 = scmp.lt.u32.totalorder %s3466_s5, %s2760_s17 }
 0x1a5   : > { %p2768_p5 = scmp.lt.u32.totalorder %s2760_s17, %s728_s9 }
 0x1a6   : > { %p2762_p7 = pnand %p2761_p4, %p4020_p1  ;;  %p2767_p2 = por %p2766_p6, %p2765_p0 }
 0x1a8   : > { %p2763_p12 = pneg %p2762_p7  ;;  %p2769_p8 = por %p2768_p5, %p2767_p2 }
 0x1aa   : > { %p2770_p11 = pnand %p2769_p8, %p2763_p12 }
 0x1ac   : > { %2773 = shalt.err (!%p2770_p11)  }
 0x1ad   : > { %s2774_s26 = scalar_lea.vmem %s738_s12, 16  ;;  %p4021_p13 = pmov %p4020_p1 }
 0x1ae   : > { %p2775_p9 = scmp.ne.s32.totalorder %s738_s12, %s2774_s26  ;;  %p2781_p4 = scmp.lt.s32.totalorder %s738_s12, %s3446_s11 }
 0x1af   : > { %p2782_p1 = scmp.lt.s32.totalorder %s3477_s3, %s2774_s26 }
 0x1b0   : > { %p2776_p3 = pnand %p2775_p9, %p4021_p13 }
 0x1b1   : > { %p2783_p7 = por %p2782_p1, %p2781_p4 }
 0x1b2   : > { %p2777_p10 = pneg %p2776_p3 }
 0x1b4   : > { %p2784_p0 = pnand %p2783_p7, %p2777_p10 }
 0x1b6   : > { %2787 = shalt.err (!%p2784_p0)  }
 0x1b7   : > { %p4022_p6 = pmov %p4021_p13  ;;  %p742_p12 = scmp.gt.s32.totalorder %s3614_s24, 0 }
 0x1b8   : > { %p2008_p2 = scmp.lt.s32.totalorder %s3614_s24, 511  ;;  %s3001_s14 = smov [#allocation2 + $0x7]  }
 0x1b9   : > { %2164 = dma.hbm_to_vmem [thread:$0]  (%p4022_p6), %s728_s9, 16, %s738_s12, [#allocation4] }
 0x1ba   : > { %s756_s0 = sshll.u32 %s3001_s14, 4  ;;  %s4077_s24 = smov (!%p742_p12, %s3614_s24), 0  ;;  %s757_s0 = int_to_ptr.vmem [resolvable:$true] %s756_s0 }
 0x1bb   : > { %s4079_s24 = smov (!%p2008_p2, %s4077_s24), 511  ;;  %p4023_p8 = pmov %p4022_p6 }
 0x1bc   : > { %s2013_s16 = sshll.u32 %s4079_s24, 4 }
 0x1bd   : > { %s747_s7 = scalar_lea.hbm %s3994_s29, %s2013_s16 }
 0x1be   : > { %s2788_s6 = scalar_lea.hbm %s747_s7, 16  ;;  %p2793_p13 = scmp.lt.u32.totalorder %s747_s7, %s3994_s29 }
 0x1bf   : > { %p2789_p5 = scmp.ne.s32.totalorder %s747_s7, %s2788_s6  ;;  %p2794_p3 = scmp.lt.u32.totalorder %s3466_s5, %s2788_s6 }
 0x1c0   : > { %p2796_p4 = scmp.lt.u32.totalorder %s2788_s6, %s747_s7 }
 0x1c1   : > { %p2790_p11 = pnand %p2789_p5, %p4023_p8  ;;  %p2795_p10 = por %p2794_p3, %p2793_p13 }
 0x1c3   : > { %p2791_p9 = pneg %p2790_p11  ;;  %p2797_p1 = por %p2796_p4, %p2795_p10 }
 0x1c5   : > { %p2798_p7 = pnand %p2797_p1, %p2791_p9 }
 0x1c7   : > { %2801 = shalt.err (!%p2798_p7)  }
 0x1c8   : > { %s2802_s12 = scalar_lea.vmem %s757_s0, 16  ;;  %p2809_p5 = scmp.lt.s32.totalorder %s757_s0, %s3446_s11 }
 0x1c9   : > { %p2803_p0 = scmp.ne.s32.totalorder %s757_s0, %s2802_s12  ;;  %p2810_p8 = scmp.lt.s32.totalorder %s3477_s3, %s2802_s12 }
 0x1cb   : > { %p2804_p12 = pnand %p2803_p0, %p4022_p6  ;;  %p2811_p11 = por %p2810_p8, %p2809_p5 }
 0x1cd   : > { %p2805_p2 = pneg %p2804_p12 }
 0x1cf   : > { %p2812_p3 = pnand %p2811_p11, %p2805_p2 }
 0x1d1   : > { %2815 = shalt.err (!%p2812_p3)  }
 0x1d2   : > { %p4024_p13 = pmov %p4022_p6  ;;  %p4025_p10 = pmov %p4022_p6 }
 0x1d4   : > { %2165 = dma.hbm_to_vmem [thread:$0]  (%p4024_p13), %s747_s7, 16, %s757_s0, [#allocation4] }
 0x1d5   : > { %2943 = dma.done.wait (%p4025_p10), [#allocation4], 128  ;;  %p4026_p9 = pmov %p4022_p6 }
 0x1d6   : > { %v2270_v0 = vld [vmem:[%s3412_s13 + $0x4] ss:$16 sps:$4 sm:$0xff]   ;;  %v2272_v1 = vld [vmem:[%s3412_s13] ss:$16 sps:$4 sm:$0xff]   ;;  %v2281_v5 = vld [vmem:[%s3412_s13 + $0xc] ss:$16 sps:$4 sm:$0xff]  }
 0x1d7   : > { %2945 = vsyncadd (%p4026_p9), [#allocation4], 4294967168  ;;  %1190 = vmatprep.subr.bf16.mxu0 %v2270_v0  ;;  %v2273_v2 = vld [vmem:[%s3412_s13 + $0x24] ss:$16 sps:$4 sm:$0xff]   ;;  %v2275_v3 = vld [vmem:[%s3412_s13 + $0x20] ss:$16 sps:$4 sm:$0xff]   ;;  %1231 = vmatprep.subr.bf16.mxu1 %v2281_v5 }
 0x1d8   : > { %1191 = vmatpush1.bf16.msra.mxu0 %v2272_v1  ;;  %v2276_v4 = vld [vmem:[%s3412_s13 + $0x44] ss:$16 sps:$4 sm:$0xff]   ;;  %v2284_v6 = vld [vmem:[%s3412_s13 + $0x8] ss:$16 sps:$4 sm:$0xff]   ;;  %v2278_v7 = vld [vmem:[%s3412_s13 + $0x40] ss:$16 sps:$4 sm:$0xff]  }
 0x1d9   : > { %1192 = vmatprep.subr.bf16.mxu0 %v2273_v2  ;;  %v2279_v8 = vld [vmem:[%s3412_s13 + $0x64] ss:$16 sps:$4 sm:$0xff]   ;;  %1232 = vmatpush1.bf16.msra.mxu1 %v2284_v6  ;;  %v2287_v9 = vld [vmem:[%s3412_s13 + $0x2c] ss:$16 sps:$4 sm:$0xff]   ;;  %v2290_v10 = vld [vmem:[%s3412_s13 + $0x28] ss:$16 sps:$4 sm:$0xff]  }
 0x1da   : > { %1233 = vmatprep.subr.bf16.mxu1 %v2287_v9  ;;  %v2283_v11 = vld [vmem:[%s3412_s13 + $0x60] ss:$16 sps:$4 sm:$0xff]   ;;  %v2285_v12 = vld [vmem:[%s3412_s13 + $0x84] ss:$16 sps:$4 sm:$0xff]   ;;  %v2293_v13 = vld [vmem:[%s3412_s13 + $0x4c] ss:$16 sps:$4 sm:$0xff]  }
 0x1db   : > { %v2296_v14 = vld [vmem:[%s3412_s13 + $0x48] ss:$16 sps:$4 sm:$0xff]   ;;  %v2299_v15 = vld [vmem:[%s3412_s13 + $0x6c] ss:$16 sps:$4 sm:$0xff]   ;;  %v2289_v16 = vld [vmem:[%s3412_s13 + $0x80] ss:$16 sps:$4 sm:$0xff]  }
 0x1dc   : > { %1193 = vmatpush1.bf16.msra.mxu0 %v2275_v3  ;;  %v2291_v17 = vld [vmem:[%s3412_s13 + $0xa4] ss:$16 sps:$4 sm:$0xff]   ;;  %v2302_v18 = vld [vmem:[%s3412_s13 + $0x68] ss:$16 sps:$4 sm:$0xff]   ;;  %v2305_v19 = vld [vmem:[%s3412_s13 + $0x8c] ss:$16 sps:$4 sm:$0xff]  }
 0x1dd   : > { %1194 = vmatprep.subr.bf16.mxu0 %v2276_v4  ;;  %1234 = vmatpush1.bf16.msra.mxu1 %v2290_v10  ;;  %v2295_v20 = vld [vmem:[%s3412_s13 + $0xa0] ss:$16 sps:$4 sm:$0xff]   ;;  %v2297_v21 = vld [vmem:[%s3412_s13 + $0xc4] ss:$16 sps:$4 sm:$0xff]   ;;  %v2308_v22 = vld [vmem:[%s3412_s13 + $0x88] ss:$16 sps:$4 sm:$0xff]   ;;  %v850_v4 = vlaneseq }
 0x1de   : > { %1235 = vmatprep.subr.bf16.mxu1 %v2293_v13  ;;  %v2311_v23 = vld [vmem:[%s3412_s13 + $0xac] ss:$16 sps:$4 sm:$0xff]   ;;  %v2301_v24 = vld [vmem:[%s3412_s13 + $0xc0] ss:$16 sps:$4 sm:$0xff]   ;;  %v2303_v25 = vld [vmem:[%s3412_s13 + $0xe4] ss:$16 sps:$4 sm:$0xff]  }
 0x1df   : > { %v2314_v26 = vld [vmem:[%s3412_s13 + $0xa8] ss:$16 sps:$4 sm:$0xff]   ;;  %v2317_v27 = vld [vmem:[%s3412_s13 + $0xcc] ss:$16 sps:$4 sm:$0xff]   ;;  %v2307_v28 = vld [vmem:[%s3412_s13 + $0xe0] ss:$16 sps:$4 sm:$0xff]  }
 0x1e0   : > { %1195 = vmatpush1.bf16.msra.mxu0 %v2278_v7  ;;  %v2309_v29 = vld [vmem:[%s3412_s13 + $0x104] ss:$16 sps:$4 sm:$0xff]   ;;  %v2320_v30 = vld [vmem:[%s3412_s13 + $0xc8] ss:$16 sps:$4 sm:$0xff]   ;;  %v2323_v31 = vld [vmem:[%s3412_s13 + $0xec] ss:$16 sps:$4 sm:$0xff]  }
 0x1e1   : > { %1196 = vmatprep.subr.bf16.mxu0 %v2279_v8  ;;  %1236 = vmatpush1.bf16.msra.mxu1 %v2296_v14  ;;  %v2313_v32 = vld [vmem:[%s3412_s13 + $0x100] ss:$16 sps:$4 sm:$0xff]   ;;  %v2315_v33 = vld [vmem:[%s3412_s13 + $0x124] ss:$16 sps:$4 sm:$0xff]   ;;  %v2326_v34 = vld [vmem:[%s3412_s13 + $0xe8] ss:$16 sps:$4 sm:$0xff]  }
 0x1e2   : > { %1237 = vmatprep.subr.bf16.mxu1 %v2299_v15  ;;  %v2329_v35 = vld [vmem:[%s3412_s13 + $0x10c] ss:$16 sps:$4 sm:$0xff]   ;;  %v2319_v36 = vld [vmem:[%s3412_s13 + $0x120] ss:$16 sps:$4 sm:$0xff]   ;;  %v2321_v37 = vld [vmem:[%s3412_s13 + $0x144] ss:$16 sps:$4 sm:$0xff]  }
 0x1e3   : > { %v2332_v38 = vld [vmem:[%s3412_s13 + $0x108] ss:$16 sps:$4 sm:$0xff]   ;;  %v2335_v39 = vld [vmem:[%s3412_s13 + $0x12c] ss:$16 sps:$4 sm:$0xff]   ;;  %v2325_v41 = vld [vmem:[%s3412_s13 + $0x140] ss:$16 sps:$4 sm:$0xff]  }
 0x1e4   : > { %1197 = vmatpush1.bf16.msra.mxu0 %v2283_v11  ;;  %v778_v40 = vld [vmem:[%s3437_s20] sm:$0xff]  ;;  %v2327_v43 = vld [vmem:[%s3412_s13 + $0x164] ss:$16 sps:$4 sm:$0xff]   ;;  %v2338_v44 = vld [vmem:[%s3412_s13 + $0x128] ss:$16 sps:$4 sm:$0xff]   ;;  %v851_v5 = vshrl.u32 %v850_v4, 7 }
 0x1e5   : > { %1198 = vmatprep.subr.bf16.mxu0 %v2285_v12  ;;  %1238 = vmatpush1.bf16.msra.mxu1 %v2302_v18  ;;  %v783_v42 = vpack.c.bf16 %v778_v40, %v778_v40  ;;  %v2341_v45 = vld [vmem:[%s3412_s13 + $0x14c] ss:$16 sps:$4 sm:$0xff]   ;;  %v2331_v46 = vld [vmem:[%s3412_s13 + $0x160] ss:$16 sps:$4 sm:$0xff]   ;;  %v2333_v47 = vld [vmem:[%s3412_s13 + $0x184] ss:$16 sps:$4 sm:$0xff]  }
 0x1e6   : > { %1239 = vmatprep.subr.bf16.mxu1 %v2305_v19  ;;  %v2344_v48 = vld [vmem:[%s3412_s13 + $0x148] ss:$16 sps:$4 sm:$0xff]   ;;  %v2347_v49 = vld [vmem:[%s3412_s13 + $0x16c] ss:$16 sps:$4 sm:$0xff]   ;;  %v2337_v50 = vld [vmem:[%s3412_s13 + $0x180] ss:$16 sps:$4 sm:$0xff]  }
 0x1e7   : > { %1222 = vmatprep.mubr.bf16.mxu0 %v783_v42  ;;  %1263 = vmatprep.mubr.bf16.mxu1 %v783_v42  ;;  %v2339_v51 = vld [vmem:[%s3412_s13 + $0x1a4] ss:$16 sps:$4 sm:$0xff]   ;;  %v2350_v52 = vld [vmem:[%s3412_s13 + $0x168] ss:$16 sps:$4 sm:$0xff]   ;;  %v2353_v53 = vld [vmem:[%s3412_s13 + $0x18c] ss:$16 sps:$4 sm:$0xff]  }
 0x1e8   : > { %1199 = vmatpush1.bf16.msra.mxu0 %v2289_v16  ;;  %v2343_v54 = vld [vmem:[%s3412_s13 + $0x1a0] ss:$16 sps:$4 sm:$0xff]   ;;  %v2345_v55 = vld [vmem:[%s3412_s13 + $0x1c4] ss:$16 sps:$4 sm:$0xff]   ;;  %v2356_v56 = vld [vmem:[%s3412_s13 + $0x188] ss:$16 sps:$4 sm:$0xff]  }
 0x1e9   : > { %1200 = vmatprep.subr.bf16.mxu0 %v2291_v17  ;;  %1240 = vmatpush1.bf16.msra.mxu1 %v2308_v22  ;;  %v2357_v57 = vld [vmem:[%s3412_s13 + $0x1ac] ss:$16 sps:$4 sm:$0xff]   ;;  %v2349_v58 = vld [vmem:[%s3412_s13 + $0x1c0] ss:$16 sps:$4 sm:$0xff]   ;;  %v2351_v59 = vld [vmem:[%s3412_s13 + $0x1e4] ss:$16 sps:$4 sm:$0xff]  }
 0x1ea   : > { %1241 = vmatprep.subr.bf16.mxu1 %v2311_v23  ;;  %v2359_v60 = vld [vmem:[%s3412_s13 + $0x1a8] ss:$16 sps:$4 sm:$0xff]   ;;  %v2360_v61 = vld [vmem:[%s3412_s13 + $0x1cc] ss:$16 sps:$4 sm:$0xff]   ;;  %v2355_v62 = vld [vmem:[%s3412_s13 + $0x1e0] ss:$16 sps:$4 sm:$0xff]  }
 0x1eb   : > { %v780_v63 = vld [vmem:[#allocation2] sm:$0xff]  ;;  %v2362_v0 = vld [vmem:[%s3412_s13 + $0x1c8] ss:$16 sps:$4 sm:$0xff]   ;;  %v852_v6 = vsub.s32 0, %v851_v5  ;;  %v856_v8 = vsub.s32 1, %v851_v5  ;;  %v864_v11 = vsub.s32 3, %v851_v5 }
 0x1ec   : > { %1201 = vmatpush1.bf16.msra.mxu0 %v2295_v20  ;;  %v2363_v1 = vld [vmem:[%s3412_s13 + $0x1ec] ss:$16 sps:$4 sm:$0xff]   ;;  %v782_v2 = vpack.c.bf16 %v780_v63, %v780_v63  ;;  %v2365_v3 = vld [vmem:[%s3412_s13 + $0x1e8] ss:$16 sps:$4 sm:$0xff]   ;;  %v848_v7 = vld [vmem:[%s3420_s2] sm:$0xf] }
 0x1ed   : > { %1202 = vmatprep.subr.bf16.mxu0 %v2297_v21  ;;  %1242 = vmatpush1.bf16.msra.mxu1 %v2314_v26  ;;  %v853_v9 = vrot.slane %v848_v7, %v852_v6  ;;  %v857_v10 = vrot.slane %v848_v7, %v856_v8  ;;  %v865_v19 = vrot.slane %v848_v7, %v864_v11  ;;  %v860_v21 = vsub.s32 2, %v851_v5  ;;  %s4027_s5 = scalar_lea.vmem [#allocation7], %s3399_s1  ;;  %s4028_s13 = scalar_lea.vmem [#allocation17], %s3399_s1 }
 0x1ee   : > { %1243 = vmatprep.subr.bf16.mxu1 %v2317_v27  ;;  %s4029_s2 = scalar_lea.vmem [#allocation16], %s3399_s1  ;;  %p2081_p4 = scmp.ne.s32.totalorder %s3183_s27, 1 }
 0x1ef   : > { %v861_v26 = vrot.slane %v848_v7, %v860_v21 }
 0x1f0   : > { %1203 = vmatpush1.bf16.msra.mxu0 %v2301_v24 }
 0x1f1   : > { %1204 = vmatprep.subr.bf16.mxu0 %v2303_v25  ;;  %1244 = vmatpush1.bf16.msra.mxu1 %v2320_v30 }
 0x1f2   : > { %1245 = vmatprep.subr.bf16.mxu1 %v2323_v31 }
 0x1f4   : > { %1205 = vmatpush1.bf16.msra.mxu0 %v2307_v28 }
 0x1f5   : > { %1206 = vmatprep.subr.bf16.mxu0 %v2309_v29  ;;  %1246 = vmatpush1.bf16.msra.mxu1 %v2326_v34 }
 0x1f6   : > { %1247 = vmatprep.subr.bf16.mxu1 %v2329_v35 }
 0x1f8   : > { %1207 = vmatpush1.bf16.msra.mxu0 %v2313_v32 }
 0x1f9   : > { %1208 = vmatprep.subr.bf16.mxu0 %v2315_v33  ;;  %1248 = vmatpush1.bf16.msra.mxu1 %v2332_v38 }
 0x1fa   : > { %1249 = vmatprep.subr.bf16.mxu1 %v2335_v39 }
 0x1fc   : > { %1209 = vmatpush1.bf16.msra.mxu0 %v2319_v36  ;;  %v777_v36 = vld [vmem:[%s4027_s5] sm:$0xff] }
 0x1fd   : > { %1210 = vmatprep.subr.bf16.mxu0 %v2321_v37  ;;  %1250 = vmatpush1.bf16.msra.mxu1 %v2338_v44 }
 0x1fe   : > { %1251 = vmatprep.subr.bf16.mxu1 %v2341_v45 }
 0x200   : > { %1211 = vmatpush1.bf16.msra.mxu0 %v2325_v41 }
 0x201   : > { %1212 = vmatprep.subr.bf16.mxu0 %v2327_v43  ;;  %1252 = vmatpush1.bf16.msra.mxu1 %v2344_v48 }
 0x202   : > { %1253 = vmatprep.subr.bf16.mxu1 %v2347_v49 }
 0x204   : > { %1213 = vmatpush1.bf16.msra.mxu0 %v2331_v46 }
 0x205   : > { %1214 = vmatprep.subr.bf16.mxu0 %v2333_v47  ;;  %1254 = vmatpush1.bf16.msra.mxu1 %v2350_v52 }
 0x206   : > { %1255 = vmatprep.subr.bf16.mxu1 %v2353_v53 }
 0x208   : > { %1215 = vmatpush1.bf16.msra.mxu0 %v2337_v50 }
 0x209   : > { %1216 = vmatprep.subr.bf16.mxu0 %v2339_v51  ;;  %1256 = vmatpush1.bf16.msra.mxu1 %v2356_v56 }
 0x20a   : > { %1257 = vmatprep.subr.bf16.mxu1 %v2357_v57 }
 0x20c   : > { %1217 = vmatpush1.bf16.msra.mxu0 %v2343_v54 }
 0x20d   : > { %1218 = vmatprep.subr.bf16.mxu0 %v2345_v55  ;;  %1258 = vmatpush1.bf16.msra.mxu1 %v2359_v60 }
 0x20e   : > { %1259 = vmatprep.subr.bf16.mxu1 %v2360_v61 }
 0x210   : > { %1219 = vmatpush1.bf16.msra.mxu0 %v2349_v58 }
 0x211   : > { %1220 = vmatprep.subr.bf16.mxu0 %v2351_v59  ;;  %1260 = vmatpush1.bf16.msra.mxu1 %v2362_v0 }
 0x212   : > { %1261 = vmatprep.subr.bf16.mxu1 %v2363_v1 }
 0x214   : > { %1221 = vmatpush1.bf16.msra.mxu0 %v2355_v62 }
 0x215   : > { %1262 = vmatpush1.bf16.msra.mxu1 %v2365_v3 }
 0x217   : > { %1223 = vmatmul.mubr.bf16.vlgmr.msra.gmra.mrb[0].mxu0 %v782_v2 }
 0x218   : > { %1264 = vmatmul.mubr.bf16.vlgmr.msra.gmra.mrb[0].mxu1 %v782_v2 }
 0x2ea   : > { %v1224_v12 = vpop.f32.mrb[0].mxu0 }
 0x2eb   : > { %v1225_v13 = vadd.f32 %v1224_v12, %v853_v9  ;;  %v1226_v14 = vpop.f32.mrb[1].mxu0  ;;  %v1265_v22 = vpop.f32.mrb[0].mxu1 }
 0x2ec   : > { %v1227_v15 = vadd.f32 %v1226_v14, %v857_v10  ;;  %v1228_v16 = vpop.f32.mrb[2].mxu0  ;;  %v1267_v23 = vpop.f32.mrb[1].mxu1  ;;  %v1266_v29 = vadd.f32 %v1265_v22, %v861_v26 }
 0x2ed   : > { %v2078_v17 = vmul.f32 -1.442695, %v1225_v13  ;;  %v1229_v18 = vpop.f32.mrb[3].mxu0  ;;  %v1268_v24 = vadd.f32 %v1267_v23, %v865_v19  ;;  %v1269_v25 = vpop.f32.mrb[2].mxu1 }
 0x2ee   : > { %v2079_v20 = vmul.f32 -1.442695, %v1227_v15  ;;  %v1270_v27 = vpop.f32.mrb[3].mxu1 }
 0x2ef   : > { %2366 = vpow2.f32 %v2078_v17  ;;  %v2080_v28 = vmul.f32 -1.442695, %v1268_v24 }
 0x2f0   : > { %2368 = vpow2.f32 %v2079_v20 }
 0x2f1   : > { %2370 = vpow2.f32 %v2080_v28 }
 0x2f2   : > { %2372 = vtanh.f32 %v1266_v29 }
 0x2f9   : > { %v2367_v30 = vpop.eup %2366 }
 0x2fa   : > { %v2369_v31 = vpop.eup %2368  ;;  %v1275_v32 = vadd.f32 1.0, %v2367_v30 }
 0x2fb   : > { %v1281_v33 = vadd.f32 1.0, %v2369_v31  ;;  %v2371_v34 = vpop.eup %2370 }
 0x2fc   : > { %2374 = vrcp.f32 %v1275_v32  ;;  %v2373_v35 = vpop.eup %2372  ;;  %v1288_v38 = vadd.f32 1.0, %v2371_v34 }
 0x2fd   : > { %2376 = vrcp.f32 %v1281_v33 }
 0x2fe   : > { %2378 = vrcp.f32 %v1288_v38 }
 0x306   : > { %v2375_v37 = vpop.eup %2374 }
 0x307   : > { %v2377_v39 = vpop.eup %2376  ;;  %v1292_v40 = vmul.f32 %v2375_v37, %v2373_v35 }
 0x308   : > { %v1291_v41 = vmul.f32 %v2377_v39, %v777_v36  ;;  %v2379_v43 = vpop.eup %2378 }
 0x30a   : > { %v1293_v42 = vadd.f32 %v1292_v40, %v1291_v41 }
 0x30c   : > { %2380 = vtanh.f32 %v1293_v42  ;;  %1297 = vst [vmem:[%s4028_s13] sm:$0xff] %v1293_v42 }
 0x313   : > { %1302 = sbr.rel (%p2081_p4) target bundleno = 796 (0x31c), region = 108 }
 0x316   : > { %v2381_v44 = vpop.eup %2380 }
 0x317   : > { %v1295_v45 = vmul.f32 %v2381_v44, %v2379_v43 }
 0x319   : > { %1296 = vst [vmem:[%s4029_s2] sm:$0xff] %v1295_v45  ;;  %1298 = vst [vmem:[#allocation2] sm:$0xff] %v1295_v45  ;;  %v1303_v46 = vpack.c.bf16 (!%p2081_p4), %v1295_v45, %v1295_v45 }
 0x31b   : > { %1304 = vst [vmem:[#allocation3] sm:$0xf] %v1303_v46 }
 0x31c PF: > { %p2082_p1 = scmp.lt.s32.totalorder %s3183_s27, 2 }
 0x31d   : > { %v2382_v47 = vld [vmem:[%s3423_s25 + $0x4] ss:$16 sps:$4 sm:$0xff] (!%p2082_p1)   ;;  %v2384_v48 = vld [vmem:[%s3423_s25 + $0xc] ss:$16 sps:$4 sm:$0xff] (!%p2082_p1)   ;;  %v3002_v49 = vmov (!%p2082_p1), 0   ;;  %v1344_v17 = vlaneseq (!%p2082_p1) }
 0x31e   : > { %1308 = sbr.rel (%p2082_p1) target bundleno = 1047 (0x417), region = 112  ;;  %1556 = vmatprep.mubr.bf16.mxu0 (!%p2082_p1), %v3002_v49  ;;  %1597 = vmatprep.mubr.bf16.mxu1 (!%p2082_p1), %v3002_v49  ;;  %v2386_v50 = vld [vmem:[%s3423_s25] ss:$16 sps:$4 sm:$0xff] (!%p2082_p1)   ;;  %v2387_v51 = vld [vmem:[%s3423_s25 + $0x8] ss:$16 sps:$4 sm:$0xff] (!%p2082_p1)  }
 0x31f   : > { %1524 = vmatprep.subr.bf16.mxu0 (!%p2082_p1), %v2382_v47  ;;  %1565 = vmatprep.subr.bf16.mxu1 (!%p2082_p1), %v2384_v48  ;;  %v2388_v52 = vld [vmem:[%s3423_s25 + $0x24] ss:$16 sps:$4 sm:$0xff] (!%p2082_p1)   ;;  %v2390_v53 = vld [vmem:[%s3423_s25 + $0x2c] ss:$16 sps:$4 sm:$0xff] (!%p2082_p1)   ;;  %v2392_v54 = vld [vmem:[%s3423_s25 + $0x20] ss:$16 sps:$4 sm:$0xff] (!%p2082_p1)  }
 0x320   : > { %1525 = vmatpush1.bf16.msra.mxu0 (!%p2082_p1), %v2386_v50  ;;  %1566 = vmatpush1.bf16.msra.mxu1 (!%p2082_p1), %v2387_v51  ;;  %v2393_v55 = vld [vmem:[%s3423_s25 + $0x28] ss:$16 sps:$4 sm:$0xff] (!%p2082_p1)   ;;  %v2394_v56 = vld [vmem:[%s3423_s25 + $0x44] ss:$16 sps:$4 sm:$0xff] (!%p2082_p1)   ;;  %v2396_v57 = vld [vmem:[%s3423_s25 + $0x4c] ss:$16 sps:$4 sm:$0xff] (!%p2082_p1)  }
 0x321   : > { %1526 = vmatprep.subr.bf16.mxu0 (!%p2082_p1), %v2388_v52  ;;  %1567 = vmatprep.subr.bf16.mxu1 (!%p2082_p1), %v2390_v53  ;;  %v2398_v58 = vld [vmem:[%s3423_s25 + $0x40] ss:$16 sps:$4 sm:$0xff] (!%p2082_p1)   ;;  %v2399_v59 = vld [vmem:[%s3423_s25 + $0x48] ss:$16 sps:$4 sm:$0xff] (!%p2082_p1)   ;;  %v2400_v60 = vld [vmem:[%s3423_s25 + $0x64] ss:$16 sps:$4 sm:$0xff] (!%p2082_p1)  }
 0x322   : > { %v2402_v61 = vld [vmem:[%s3423_s25 + $0x6c] ss:$16 sps:$4 sm:$0xff] (!%p2082_p1)   ;;  %v2404_v62 = vld [vmem:[%s3423_s25 + $0x60] ss:$16 sps:$4 sm:$0xff] (!%p2082_p1)   ;;  %v2405_v63 = vld [vmem:[%s3423_s25 + $0x68] ss:$16 sps:$4 sm:$0xff] (!%p2082_p1)  }
 0x323   : > { %v2406_v0 = vld [vmem:[%s3423_s25 + $0x84] ss:$16 sps:$4 sm:$0xff] (!%p2082_p1)   ;;  %v2408_v1 = vld [vmem:[%s3423_s25 + $0x8c] ss:$16 sps:$4 sm:$0xff] (!%p2082_p1)   ;;  %v2410_v2 = vld [vmem:[%s3423_s25 + $0x80] ss:$16 sps:$4 sm:$0xff] (!%p2082_p1)  }
 0x324   : > { %1527 = vmatpush1.bf16.msra.mxu0 (!%p2082_p1), %v2392_v54  ;;  %1568 = vmatpush1.bf16.msra.mxu1 (!%p2082_p1), %v2393_v55  ;;  %v2411_v3 = vld [vmem:[%s3423_s25 + $0x88] ss:$16 sps:$4 sm:$0xff] (!%p2082_p1)   ;;  %v2412_v4 = vld [vmem:[%s3423_s25 + $0xa4] ss:$16 sps:$4 sm:$0xff] (!%p2082_p1)   ;;  %v2414_v5 = vld [vmem:[%s3423_s25 + $0xac] ss:$16 sps:$4 sm:$0xff] (!%p2082_p1)  }
 0x325   : > { %1528 = vmatprep.subr.bf16.mxu0 %v2394_v56  ;;  %1569 = vmatprep.subr.bf16.mxu1 %v2396_v57  ;;  %v2416_v6 = vld [vmem:[%s3423_s25 + $0xa0] ss:$16 sps:$4 sm:$0xff]   ;;  %v2417_v7 = vld [vmem:[%s3423_s25 + $0xa8] ss:$16 sps:$4 sm:$0xff]   ;;  %v2418_v8 = vld [vmem:[%s3423_s25 + $0xc4] ss:$16 sps:$4 sm:$0xff]  }
 0x326   : > { %v2420_v9 = vld [vmem:[%s3423_s25 + $0xcc] ss:$16 sps:$4 sm:$0xff]   ;;  %v2422_v10 = vld [vmem:[%s3423_s25 + $0xc0] ss:$16 sps:$4 sm:$0xff]   ;;  %v2423_v11 = vld [vmem:[%s3423_s25 + $0xc8] ss:$16 sps:$4 sm:$0xff]  }
 0x327   : > { %v2424_v12 = vld [vmem:[%s3423_s25 + $0xe4] ss:$16 sps:$4 sm:$0xff]   ;;  %v2426_v13 = vld [vmem:[%s3423_s25 + $0xec] ss:$16 sps:$4 sm:$0xff]   ;;  %v2428_v14 = vld [vmem:[%s3423_s25 + $0xe0] ss:$16 sps:$4 sm:$0xff]  }
 0x328   : > { %1529 = vmatpush1.bf16.msra.mxu0 %v2398_v58  ;;  %1570 = vmatpush1.bf16.msra.mxu1 %v2399_v59  ;;  %v2429_v15 = vld [vmem:[%s3423_s25 + $0xe8] ss:$16 sps:$4 sm:$0xff]   ;;  %v1309_v16 = vld [vmem:[#allocation3] sm:$0xf]  ;;  %v1345_v18 = vshrl.u32 %v1344_v17, 7 }
 0x329   : > { %1530 = vmatprep.subr.bf16.mxu0 %v2400_v60  ;;  %1571 = vmatprep.subr.bf16.mxu1 %v2402_v61  ;;  %v1342_v21 = vld [vmem:[%s3439_s4] sm:$0xf] }
 0x32a   : > { %v1346_v19 = vsub.s32 0, %v1345_v18  ;;  %v1354_v20 = vsub.s32 2, %v1345_v18  ;;  %v1350_v22 = vsub.s32 1, %v1345_v18  ;;  %v1358_v23 = vsub.s32 3, %v1345_v18 }
 0x32c   : > { %1531 = vmatpush1.bf16.msra.mxu0 %v2404_v62  ;;  %1572 = vmatpush1.bf16.msra.mxu1 %v2405_v63  ;;  %v1347_v24 = vrot.slane %v1342_v21, %v1346_v19  ;;  %v1355_v25 = vrot.slane %v1342_v21, %v1354_v20  ;;  %v1351_v26 = vrot.slane %v1342_v21, %v1350_v22 }
 0x32d   : > { %1532 = vmatprep.subr.bf16.mxu0 %v2406_v0  ;;  %1573 = vmatprep.subr.bf16.mxu1 %v2408_v1  ;;  %v1359_v27 = vrot.slane %v1342_v21, %v1358_v23 }
 0x330   : > { %1533 = vmatpush1.bf16.msra.mxu0 %v2410_v2  ;;  %1574 = vmatpush1.bf16.msra.mxu1 %v2411_v3 }
 0x331   : > { %1534 = vmatprep.subr.bf16.mxu0 %v2412_v4  ;;  %1575 = vmatprep.subr.bf16.mxu1 %v2414_v5 }
 0x334   : > { %1535 = vmatpush1.bf16.msra.mxu0 %v2416_v6  ;;  %1576 = vmatpush1.bf16.msra.mxu1 %v2417_v7 }
 0x335   : > { %1536 = vmatprep.subr.bf16.mxu0 %v2418_v8  ;;  %1577 = vmatprep.subr.bf16.mxu1 %v2420_v9 }
 0x338   : > { %1537 = vmatpush1.bf16.msra.mxu0 %v2422_v10  ;;  %1578 = vmatpush1.bf16.msra.mxu1 %v2423_v11 }
 0x339   : > { %1538 = vmatprep.subr.bf16.mxu0 %v2424_v12  ;;  %1579 = vmatprep.subr.bf16.mxu1 %v2426_v13 }
 0x33c   : > { %1539 = vmatpush1.bf16.msra.mxu0 %v2428_v14  ;;  %1580 = vmatpush1.bf16.msra.mxu1 %v2429_v15 }
 0x33f   : > { %1557 = vmatmul.mubr.bf16.vlgmr.msra.gmra.mrb[0].mxu0 %v1309_v16  ;;  %1598 = vmatmul.mubr.bf16.vlgmr.msra.gmra.mrb[0].mxu1 %v1309_v16 }
 0x412   : > { %v1558_v28 = vpop.f32.mrb[0].mxu0  ;;  %v1599_v29 = vpop.f32.mrb[0].mxu1 }
 0x413   : > { %v1559_v30 = vadd.f32 %v1558_v28, %v1347_v24  ;;  %v1600_v31 = vadd.f32 %v1599_v29, %v1355_v25  ;;  %v1560_v32 = vpop.f32.mrb[1].mxu0  ;;  %v1601_v33 = vpop.f32.mrb[1].mxu1 }
 0x414   : > { %v1561_v34 = vadd.f32 %v1560_v32, %v1351_v26  ;;  %v1602_v35 = vadd.f32 %v1601_v33, %v1359_v27  ;;  %v1562_v36 = vpop.f32.mrb[2].mxu0  ;;  %v1603_v37 = vpop.f32.mrb[2].mxu1 }
 0x415   : > { %1606 = vst [vmem:[%s3443_s30] sm:$0xff] %v1559_v30  ;;  %1608 = vst [vmem:[%s3443_s30 + $0x10] sm:$0xff] %v1600_v31  ;;  %v1563_v38 = vpop.f32.mrb[3].mxu0  ;;  %v1604_v39 = vpop.f32.mrb[3].mxu1 }
 0x416   : > { %1607 = vst [vmem:[%s3443_s30 + $0x8] sm:$0xff] %v1561_v34  ;;  %1609 = vst [vmem:[%s3443_s30 + $0x18] sm:$0xff] %v1602_v35 }
 0x417 PF: > { %s4030_s25 = sld [smem:[#allocation55_spill]]  ;;  %s2118_s20 = sshll.u32 %s3431_s22, 7 }
 0x418   : > { %s4031_s3 = sld [smem:[#allocation68_spill]]  ;;  %s4032_s9 = scalar_lea.vmem [#allocation17], %s3399_s1 }
 0x419   : > { %s1651_s10 = sshll.u32 %s4032_s9, 4  ;;  %s1616_s15 = scalar_lea.sflag [#allocation18], %s3408_s8  ;;  %s1652_s10 = int_to_ptr.vmem [resolvable:$true] %s1651_s10 }
 0x41a   : > { %s2816_s26 = scalar_lea.vmem %s1652_s10, 128  ;;  %s3003_s14 = smov [#allocation17]  }
 0x41b   : > { %p2817_p7 = scmp.ne.s32.totalorder %s1652_s10, %s2816_s26  ;;  %s2820_s0 = sshll.u32 %s3003_s14, 4  ;;  %s2821_s0 = int_to_ptr.vmem [resolvable:$false] %s2820_s0 }
 0x41c   : > { %s2822_s16 = scalar_lea.vmem %s2821_s0, 256  ;;  %p2823_p2 = scmp.lt.s32.totalorder %s1652_s10, %s2821_s0 }
 0x41d   : > { %p4033_p0 = scmp.ne.s32.totalorder %s4030_s25, 0  ;;  %p2824_p5 = scmp.lt.s32.totalorder %s2822_s16, %s2816_s26 }
 0x41e   : > { %s3772_s24 = scalar_lea.hbm %s4031_s3, %s2118_s20 }
 0x41f   : > { %p2818_p6 = pnand %p2817_p7, %p4033_p0  ;;  %p2825_p8 = por %p2824_p5, %p2823_p2 }
 0x421   : > { %p2819_p12 = pneg %p2818_p6 }
 0x423   : > { %p2826_p11 = pnand %p2825_p8, %p2819_p12 }
 0x425   : > { %2829 = shalt.err (!%p2826_p11)
}
 0x426   : > { %s2830_s28 = scalar_lea.hbm %s3772_s24, 128  ;;  %s2834_s6 = scalar_lea.hbm %s4031_s3, 256 }
 0x427   : > { %p2831_p3 = scmp.ne.s32.totalorder %s3772_s24, %s2830_s28  ;;  %p2835_p9 = scmp.lt.u32.totalorder %s3772_s24, %s4031_s3 }
 0x428   : > { %p2836_p4 = scmp.lt.u32.totalorder %s2834_s6, %s2830_s28  ;;  %p2838_p7 = scmp.lt.u32.totalorder %s2830_s28, %s3772_s24 }
 0x429   : > { %p2832_p13 = pnand %p2831_p3, %p4033_p0 }
 0x42a   : > { %p2837_p1 = por %p2836_p4, %p2835_p9 }
 0x42b   : > { %p2833_p10 = pneg %p2832_p13 }
 0x42c   : > { %p2839_p6 = por %p2838_p7, %p2837_p1 }
 0x42e   : > { %p2840_p12 = pnand %p2839_p6, %p2833_p10 }
 0x430   : > { %2843 = shalt.err (!%p2840_p12)
}
 0x431   : > { %2168 = dma.vmem_to_hbm [thread:$0]  (%p4033_p0), %s1652_s10, 128, %s3772_s24, %s1616_s15  }
 0x432   : > { %s4034_s13 = sld [smem:[#allocation67_spill]]  ;;  %s4035_s4 = scalar_lea.vmem [#allocation16], %s3399_s1 }
 0x433   : > { %s1636_s11 = sshll.u32 %s4035_s4, 4  ;;  %s2120_s9 = sadd.s32 4294967294, %s3183_s27  ;;  %s3805_s11 = int_to_ptr.vmem [resolvable:$true] %s1636_s11 }
 0x434   : > { %s1611_s26 = scalar_lea.sflag [#allocation9], %s3396_s23  ;;  %s2844_s14 = scalar_lea.vmem %s3805_s11, 128 }
 0x435   : > { %p2845_p2 = scmp.ne.s32.totalorder %s3805_s11, %s2844_s14  ;;  %s3004_s22 = smov [#allocation16]  }
 0x436   : > { %s2848_s24 = sshll.u32 %s3004_s22, 4  ;;  %s2849_s24 = int_to_ptr.vmem [resolvable:$false] %s2848_s24 }
 0x437   : > { %p2846_p5 = pnand %p2845_p2, %p4033_p0  ;;  %s2850_s10 = scalar_lea.vmem %s2849_s24, 256 }
 0x438   : > { %s3801_s2 = scalar_lea.hbm %s4034_s13, %s2118_s20  ;;  %p2851_p11 = scmp.lt.s32.totalorder %s3805_s11, %s2849_s24 }
 0x439   : > { %p2847_p8 = pneg %p2846_p5  ;;  %p2852_p3 = scmp.lt.s32.totalorder %s2850_s10, %s2844_s14 }
 0x43b   : > { %p2853_p13 = por %p2852_p3, %p2851_p11 }
 0x43d   : > { %p2854_p10 = pnand %p2853_p13, %p2847_p8 }
 0x43f   : > { %2857 = shalt.err (!%p2854_p10)
}
 0x440   : > { %s2858_s23 = scalar_lea.hbm %s3801_s2, 128  ;;  %s2862_s0 = scalar_lea.hbm %s4034_s13, 256 }
 0x441   : > { %p2859_p9 = scmp.ne.s32.totalorder %s3801_s2, %s2858_s23  ;;  %p2863_p7 = scmp.lt.u32.totalorder %s3801_s2, %s4034_s13 }
 0x442   : > { %p2864_p6 = scmp.lt.u32.totalorder %s2862_s0, %s2858_s23  ;;  %p2866_p2 = scmp.lt.u32.totalorder %s2858_s23, %s3801_s2 }
 0x443   : > { %p2860_p4 = pnand %p2859_p9, %p4033_p0 }
 0x444   : > { %p2865_p12 = por %p2864_p6, %p2863_p7 }
 0x445   : > { %p2861_p1 = pneg %p2860_p4 }
 0x446   : > { %p2867_p5 = por %p2866_p2, %p2865_p12 }
 0x448   : > { %p2868_p8 = pnand %p2867_p5, %p2861_p1 }
 0x44a   : > { %2871 = shalt.err (!%p2868_p8)
}
 0x44b   : > { %s4036_s19 = sld [smem:[#allocation57_spill]]  ;;  %p1659_p11 = scmp.gt.s32.totalorder %s2120_s9, 0 }
 0x44c   : > { %2167 = dma.vmem_to_hbm [thread:$0]  (%p4033_p0), %s3805_s11, 128, %s3801_s2, %s1611_s26  }
 0x44d   : > { %s1668_s7 = sshll.u32 %s3443_s30, 4  ;;  %s4081_s9 = smov (!%p1659_p11, %s2120_s9), 0  ;;  %s3835_s7 = int_to_ptr.vmem [resolvable:$true] %s1668_s7 }
 0x44e   : > { %s2146_s6 = sshll.u32 %s4081_s9, 9  ;;  %s4037_s17 = sld [smem:[#allocation69_spill]] }
 0x44f   : > { %s2872_s5 = scalar_lea.vmem %s3835_s7, 512  ;;  %s3005_s2 = smov [#allocation19]  }
 0x450   : > { %p2873_p3 = scmp.ne.s32.totalorder %s3835_s7, %s2872_s5  ;;  %s2876_s4 = sshll.u32 %s3005_s2, 4  ;;  %s2877_s4 = int_to_ptr.vmem [resolvable:$false] %s2876_s4 }
 0x451   : > { %p4038_p13 = scmp.ne.s32.totalorder %s4036_s19, 0  ;;  %s2878_s27 = scalar_lea.vmem %s2877_s4, 1024 }
 0x452   : > { %p2879_p9 = scmp.lt.s32.totalorder %s3835_s7, %s2877_s4  ;;  %p2880_p4 = scmp.lt.s32.totalorder %s2878_s27, %s2872_s5 }
 0x453   : > { %p2874_p10 = pnand %p2873_p3, %p4038_p13 }
 0x454   : > { %s1666_s12 = scalar_lea.hbm %s4037_s17, %s2146_s6  ;;  %p2881_p1 = por %p2880_p4, %p2879_p9 }
 0x455   : > { %p2875_p0 = pneg %p2874_p10 }
 0x457   : > { %p2882_p7 = pnand %p2881_p1, %p2875_p0 }
 0x459   : > { %2885 = shalt.err (!%p2882_p7)
}
 0x45a   : > { %s2886_s30 = scalar_lea.hbm %s1666_s12, 512  ;;  %s2890_s26 = scalar_lea.hbm %s4037_s17, 512 }
 0x45b   : > { %p2887_p6 = scmp.ne.s32.totalorder %s1666_s12, %s2886_s30  ;;  %p2891_p5 = scmp.lt.u32.totalorder %s1666_s12, %s4037_s17 }
 0x45c   : > { %p2892_p8 = scmp.lt.u32.totalorder %s2890_s26, %s2886_s30  ;;  %p2894_p3 = scmp.lt.u32.totalorder %s2886_s30, %s1666_s12 }
 0x45d   : > { %p2888_p12 = pnand %p2887_p6, %p4038_p13 }
 0x45e   : > { %p2893_p11 = por %p2892_p8, %p2891_p5 }
 0x45f   : > { %p2889_p2 = pneg %p2888_p12 }
 0x460   : > { %p2895_p10 = por %p2894_p3, %p2893_p11 }
 0x462   : > { %p2896_p0 = pnand %p2895_p10, %p2889_p2 }
 0x464   : > { %2899 = shalt.err (!%p2896_p0)
}
 0x465   : > { %2169 = dma.vmem_to_hbm [thread:$0]  (%p4038_p13), %s3835_s7, 512, %s1666_s12, %s1616_s15  }
 0x466 PF: > { %s4039_s24 = sld [smem:[#allocation50_spill]]  ;;  %s4040_s10 = sld [smem:[#allocation47_spill]] }
 0x467   : > { %s4041_s23 = sld [smem:[#allocation58_spill]] }
 0x46c   : > { %p2201_p9 = scmp.ge.s32.totalorder %s4039_s24, 2  ;;  %s1680_s1 = sand.u32 1, %s4040_s10  }
 0x46d   : > { %p4042_p4 = scmp.ne.s32.totalorder %s4041_s23, 0  ;;  %s1681_s20 = scalar_lea.sflag [#allocation9], %s1680_s1 }
 0x46f   : > { %p2190_p1 = pnand %p2201_p9, %p4042_p4 }
 0x471   : > { %2947 = dma.done.wait (!%p2190_p1), %s1681_s20, 128  }
 0x472   : > { %2949 = vsyncadd (!%p2190_p1), %s1681_s20, 4294967168  ;;  %s4043_s0 = sld [smem:[#allocation53_spill]] }
 0x478   : > { %s1689_s16 = sand.u32 1, %s4043_s0  }
 0x479   : > { %s1690_s28 = scalar_lea.sflag [#allocation18], %s1689_s16 }
 0x47a   : > { %2951 = dma.done.wait (!%p2190_p1), %s1690_s28, 128  }
 0x47b   : > { %2953 = vsyncadd (!%p2190_p1), %s1690_s28, 4294967168  ;;  %s4044_s19 = sld [smem:[#allocation59_spill]] }
 0x481   : > { %p4045_p7 = scmp.ne.s32.totalorder %s4044_s19, 0 }
 0x483   : > { %p2196_p6 = pnand %p2201_p9, %p4045_p7 }
 0x485   : > { %2955 = dma.done.wait (!%p2196_p6), %s1690_s28, 512  }
 0x486   : > { %2957 = vsyncadd (!%p2196_p6), %s1690_s28, 4294966784  ;;  %s4046_s23 = sld [smem:[#allocation51_spill]]  ;;  %s4047_s8 = sld [smem:[#allocation46_spill]] }
 0x487   : > { %s4048_s19 = sld [smem:[#allocation56_spill]]  ;;  %s4049_s20 = sld [smem:[#allocation48_spill]] }
 0x488   : > { %s4050_s21 = sld [smem:[#allocation49_spill]]  ;;  %s4051_s22 = sld [smem:[#allocation52_spill]] }
 0x489   : > { %s4052_s0 = smov %s2964_s18 }
 0x48c   : > { %p39_p13 = scmp.ge.s32.totalorder %s4046_s23, 5   ;;  %s4053_s18 = smov %s4047_s8 }
 0x48e   :  { %41 = sbr.rel (!%p39_p13) target bundleno = 30 (0x1e), region = 235 }
 0x495   :  { %1704 = vsyncpa [#allocation8], 1 }
 0x496   :  { %1706 = vsyncpa [#allocation8 + $0x1], 1 }
 0x497   :  { %1707 = vsyncpa [#allocation11], 1 }
 0x498   :  { %1709 = vsyncpa [#allocation11 + $0x1], 1 }
 0x499   :  { %1710 = vsyncpa [#allocation14], 1 }
 0x49a   :  { %1712 = vsyncpa [#allocation14 + $0x1], 1 }
 0x49b   :  { %1713 = vsyncpa [#allocation9], 1 }
 0x49c   :  { %1715 = vsyncpa [#allocation9 + $0x1], 1 }
 0x49d   :  { %1716 = vsyncpa [#allocation18], 1 }
 0x49e   :  { %1718 = vsyncpa [#allocation18 + $0x1], 1 }
 0x49f   :  { %1719 = vsyncmov [#allocation4] }
 0x4a2   :  { %s1720_s15 = vpop.sfrf %1719 }
 0x4a3   :  { %p2125_p12 = scmp.ne.s32.totalorder %s1720_s15, 0 }
 0x4a5   :  { %1724 = shalt.err (%p2125_p12)  }

</bundles_post_ra>
